<compile_context>
chip_gen: v7x
topology: tpu7x:2x2x1
jax: 0.10.0
libtpu: 0.0.40
codegen_flags: <defaults>
</compile_context>

<pallas_src>
import functools

import jax
import jax.numpy as jnp
import numpy as np
from jax.experimental import pallas as pl
from jax.experimental.pallas import tpu as pltpu

LANE = 128


def _pad_up(n, m=LANE):
    return ((n + m - 1) // m) * m


def _pick_tile(n, max_tile=512, align=16):
    """Largest divisor of n that is a multiple of `align` (16 = bf16 sublane
    packing) and <= max_tile; keeps >= 2 grid steps when possible so both v7x
    TensorCores / megacore halves get work."""
    best = None
    for cand in range(align, min(max_tile, n) + 1, align):
        if n % cand == 0:
            best = cand
    if best is None:  # no 16-aligned divisor: fall back to 8-alignment (f32 tiling)
        for cand in range(8, min(max_tile, n) + 1, 8):
            if n % cand == 0:
                best = cand
    if best is None:  # pathological n: single full-extent block
        return n
    if n // best < 2 and best % (2 * align) == 0:
        best //= 2  # leave >= 2 grid steps, stay aligned
    return best


def _vmem_limit_bytes():
    """Most of physical VMEM (128 MiB on v5e/v6e, 64 MiB per TC on v7x)."""
    try:
        cap = int(pltpu.get_tpu_info().vmem_capacity_bytes)
    except Exception:
        cap = 64 * 1024 * 1024
    return int(min(cap * 0.85, 112 * 1024 * 1024))


def _compiler_params():
    return pltpu.CompilerParams(
        dimension_semantics=("parallel",),
        vmem_limit_bytes=_vmem_limit_bytes(),
    )


def _resident_spec(block_shape, index_map):
    """Spec for a grid-invariant input: single-buffer it (halves its VMEM use)."""
    if hasattr(pl, "Buffered"):
        try:
            return pl.BlockSpec(block_shape, index_map, pipeline_mode=pl.Buffered(1))
        except Exception:
            pass
    return pl.BlockSpec(block_shape, index_map)


def _split_hi_lo(a_f32):
    """f32 -> (bf16 hi, bf16 lo) with hi + lo == a to ~2^-16 relative error."""
    hi = a_f32.astype(jnp.bfloat16)
    lo = (a_f32 - hi.astype(jnp.float32)).astype(jnp.bfloat16)
    return hi, lo


def _sage_layer1_kernel(adj_ref, xhi_ref, xlo_ref, *rest, tile, deg_col, project_w1):
    """conv1 ('gcn' aggregate + linear + bias + relu), fused with conv2's projection.

    Aggregation = two bf16 MXU passes (hi/lo feature split, f32 accumulation)
    directly off the bf16 adjacency strip; the ones column at `deg_col` makes the
    same matmul produce the in-degree for free.
    """
    if project_w1:
        w1_ref, b1_ref, w2_ref, one_ref, zhi_ref, zlo_ref = rest
    else:  # features were pre-projected by W1 in the wrapper (narrower slab)
        b1_ref, w2_ref, one_ref, zhi_ref, zlo_ref = rest

    i = pl.program_id(0)
    adj = adj_ref[...]                                               # bf16 -> MXU directly
    agg = jnp.dot(adj, xhi_ref[...], preferred_element_type=jnp.float32)
    agg = agg + jnp.dot(adj, xlo_ref[...], preferred_element_type=jnp.float32)
    deg = agg[:, deg_col:deg_col + 1]                                # ones column -> in-degree

    row0 = pl.multiple_of(i * tile, tile)                            # self feats from resident slab
    x_self = (xhi_ref[pl.ds(row0, tile), :].astype(jnp.float32)
              + xlo_ref[pl.ds(row0, tile), :].astype(jnp.float32))
    inv = pl.reciprocal(deg + 1.0, approx=False)                     # EUP, not VALU divide
    h = (agg + x_self) * inv                                         # normalized 'gcn' aggregate

    if project_w1:
        y = jnp.dot(h, w1_ref[...], preferred_element_type=jnp.float32) + b1_ref[...]
    else:
        y = h + b1_ref[...]
    r = jnp.maximum(y, 0.0)                                          # relu(conv1(x))
    # Re-associated conv2 projection; the precomputed one-hot row replants the
    # ones column so conv2's aggregation matmul also yields the degree for free.
    z2 = jnp.dot(r, w2_ref[...], preferred_element_type=jnp.float32) + one_ref[...]
    z_hi = z2.astype(jnp.bfloat16)
    zhi_ref[...] = z_hi
    zlo_ref[...] = (z2 - z_hi.astype(jnp.float32)).astype(jnp.bfloat16)


def _sage_layer2_kernel(adj_ref, zhi_ref, zlo_ref, b2_ref, out_ref, *, tile, deg_col):
    """conv2 aggregation + normalization + bias (projection already applied)."""
    i = pl.program_id(0)
    adj = adj_ref[...]                                               # bf16 -> MXU directly
    agg = jnp.dot(adj, zhi_ref[...], preferred_element_type=jnp.float32)
    agg = agg + jnp.dot(adj, zlo_ref[...], preferred_element_type=jnp.float32)
    deg = agg[:, deg_col:deg_col + 1]
    row0 = pl.multiple_of(i * tile, tile)
    z_self = (zhi_ref[pl.ds(row0, tile), :].astype(jnp.float32)
              + zlo_ref[pl.ds(row0, tile), :].astype(jnp.float32))
    inv = pl.reciprocal(deg + 1.0, approx=False)
    out_ref[...] = (agg + z_self) * inv + b2_ref[...]


def sage_forward(adj, x, params, *, tile=None):
    """SAGE.forward: conv1 -> relu -> conv2 (DGL 'gcn' aggregator).

    `adj` is a dense adjacency with adj[dst, src] = 1. Pass it already cast to
    bfloat16 (exact for {0,1}) and reuse it across calls — the cast is hoisted
    out of the forward path.
    """
    # TODO(synk): store the adjacency as int8/uint8 and upcast int8->bf16 on the
    # VPU inside the kernel to halve the dominant HBM stream again.
    w1, b1, w2, b2 = params                      # PyTorch layout: w is (out, in)
    n, f_in = x.shape
    hid = w1.shape[0]
    f_out = w2.shape[0]
    if tile is None:
        tile = _pick_tile(n)
    assert n % tile == 0 and tile % 8 == 0

    if adj.dtype != jnp.bfloat16:
        adj = adj.astype(jnp.bfloat16)           # fallback only; callers should cache bf16 adj

    f32 = jnp.float32
    x = x.astype(f32)
    w1t = w1.T.astype(f32)
    w2t = w2.T.astype(f32)

    # Aggregate on whichever side of W1 has the narrower lane-padded width: when
    # pad(hid+1) < pad(f_in+1), pre-project x by W1 (exact re-association since
    # the degree normalization is a per-row scale) so both the resident slab and
    # the dominant matmul are narrower.
    f1p_raw = _pad_up(f_in + 1)
    hidp = _pad_up(hid + 1)
    project_w1 = hidp >= f1p_raw                 # True -> kernel applies W1 (original path)

    if project_w1:
        feats, deg1_col, slab_w = x, f_in, f1p_raw
    else:
        feats = jnp.dot(x, w1t, precision=jax.lax.Precision.HIGHEST)
        deg1_col, slab_w = hid, hidp

    f2p = _pad_up(f_out + 1)                     # lane-dense width for [z2 | 1 | 0...]

    slab = jnp.zeros((n, slab_w), f32).at[:, :feats.shape[1]].set(feats)
    slab = slab.at[:, deg1_col].set(1.0)
    xhi, xlo = _split_hi_lo(slab)                # bf16 hi/lo pair for the MXU

    one_row = jnp.zeros((1, f2p), f32).at[0, f_out].set(1.0)   # hoisted ones-column one-hot
    b2_pad = jnp.zeros((1, f2p), f32).at[0, :f_out].set(b2.astype(f32))

    if project_w1:
        w1_pad = jnp.zeros((slab_w, hid), f32).at[:f_in, :].set(w1t)
        b1_row = b1.reshape(1, hid).astype(f32)
        w2_pad = jnp.zeros((hid, f2p), f32).at[:, :f_out].set(w2t)
        extra_ops = (w1_pad, b1_row, w2_pad, one_row)
        extra_specs = [
            _resident_spec((slab_w, hid), lambda i: (0, 0)),
            _resident_spec((1, hid), lambda i: (0, 0)),
            _resident_spec((hid, f2p), lambda i: (0, 0)),
            _resident_spec((1, f2p), lambda i: (0, 0)),
        ]
    else:
        b1_row = jnp.zeros((1, slab_w), f32).at[0, :hid].set(b1.astype(f32))
        w2_pad = jnp.zeros((slab_w, f2p), f32).at[:hid, :f_out].set(w2t)
        extra_ops = (b1_row, w2_pad, one_row)
        extra_specs = [
            _resident_spec((1, slab_w), lambda i: (0, 0)),
            _resident_spec((slab_w, f2p), lambda i: (0, 0)),
            _resident_spec((1, f2p), lambda i: (0, 0)),
        ]

    # TODO(synk): for very large N (where the (n, slab_w) feature slabs or the
    # (tile, n) adj strip no longer fit VMEM — roughly 24-32K nodes on v7x's
    # 64 MiB), add a second 'arbitrary' source-node grid axis with an f32
    # accumulator scratch (init/finalize via pl.when) instead of keeping them
    # resident, plus a second dst-indexed view of the slab for the self term.

    k1 = functools.partial(_sage_layer1_kernel, tile=tile, deg_col=deg1_col,
                           project_w1=project_w1)
    zhi, zlo = pl.pallas_call(
        k1,
        out_shape=(jax.ShapeDtypeStruct((n, f2p), jnp.bfloat16),
                   jax.ShapeDtypeStruct((n, f2p), jnp.bfloat16)),
        grid_spec=pltpu.PrefetchScalarGridSpec(
            num_scalar_prefetch=0,
            grid=(n // tile,),
            in_specs=[
                pl.BlockSpec((tile, n), lambda i: (i, 0)),        # bf16 adj dst strip (pipelined)
                _resident_spec((n, slab_w), lambda i: (0, 0)),    # feature slab, hi half
                _resident_spec((n, slab_w), lambda i: (0, 0)),    # feature slab, lo half
            ] + extra_specs,
            out_specs=[
                pl.BlockSpec((tile, f2p), lambda i: (i, 0)),      # [z2 | 1] hi
                pl.BlockSpec((tile, f2p), lambda i: (i, 0)),      # [z2 | 1] lo
            ],
        ),
        compiler_params=_compiler_params(),
    )(adj, xhi, xlo, *extra_ops)

    k2 = functools.partial(_sage_layer2_kernel, tile=tile, deg_col=f_out)
    out_pad = pl.pallas_call(
        k2,
        out_shape=jax.ShapeDtypeStruct((n, f2p), jnp.float32),
        grid_spec=pltpu.PrefetchScalarGridSpec(
            num_scalar_prefetch=0,
            grid=(n // tile,),
            in_specs=[
                pl.BlockSpec((tile, n), lambda i: (i, 0)),        # bf16 adj dst strip (pipelined)
                _resident_spec((n, f2p), lambda i: (0, 0)),       # [z2 | 1] hi
                _resident_spec((n, f2p), lambda i: (0, 0)),       # [z2 | 1] lo
                _resident_spec((1, f2p), lambda i: (0, 0)),       # b2 (zero-padded)
            ],
            out_specs=pl.BlockSpec((tile, f2p), lambda i: (i, 0)),
        ),
        compiler_params=_compiler_params(),
    )(adj, zhi, zlo, b2_pad)

    return out_pad[:, :f_out]


def sage_reference(adj, x, params):
    """Pure-JAX f32 reference of the DGL 'gcn' SAGEConv math (spec order)."""
    w1, b1, w2, b2 = params
    hp = jax.lax.Precision.HIGHEST
    deg = jnp.sum(adj, axis=-1, keepdims=True)

    def layer(feats, w, bias):
        h = (jnp.dot(adj, feats, precision=hp) + feats) / (deg + 1.0)
        return jnp.dot(h, w.T, precision=hp) + bias

    h = jax.nn.relu(layer(x, w1, b1))
    return layer(h, w2, b2)


if __name__ == "__main__":
    N = 256            # number of graph nodes
    IN_FEATS = 8
    HID_FEATS = 32
    OUT_FEATS = 16

    key = jax.random.PRNGKey(0)
    k_adj, k_x, k_w1, k_w2, k_b1, k_b2 = jax.random.split(key, 6)

    # random directed graph, ~10% edge density, no self loops
    adj_f32 = (jax.random.uniform(k_adj, (N, N)) < 0.1).astype(jnp.float32)
    adj_f32 = adj_f32 * (1.0 - jnp.eye(N, dtype=jnp.float32))
    adj_bf16 = adj_f32.astype(jnp.bfloat16)       # cached once; exact for {0,1}

    x = jax.random.normal(k_x, (N, IN_FEATS), dtype=jnp.float32)

    def xavier(k, fan_out, fan_in):
        bound = float(np.sqrt(6.0 / (fan_in + fan_out)))
        return jax.random.uniform(k, (fan_out, fan_in), jnp.float32,
                                  minval=-bound, maxval=bound)

    w1 = xavier(k_w1, HID_FEATS, IN_FEATS)
    b1 = 0.1 * jax.random.normal(k_b1, (HID_FEATS,), dtype=jnp.float32)
    w2 = xavier(k_w2, OUT_FEATS, HID_FEATS)
    b2 = 0.1 * jax.random.normal(k_b2, (OUT_FEATS,), dtype=jnp.float32)
    params = (w1, b1, w2, b2)

    out = jax.block_until_ready(sage_forward(adj_bf16, x, params))
    ref = jax.block_until_ready(sage_reference(adj_f32, x, params))

    np.testing.assert_allclose(np.asarray(out), np.asarray(ref),
                               rtol=1e-4, atol=1e-4)
    assert out.shape == (N, OUT_FEATS)
    print("KERNEL_OK")
</pallas_src>

<mosaic_0001>
module attributes {stable_mosaic.version = 11 : i64} {
  func.func @_sage_layer1_kernel(%arg0: i32, %arg1: memref<128x256xbf16, #tpu.memory_space<vmem>>, %arg2: memref<256x128xbf16, #tpu.memory_space<vmem>>, %arg3: memref<256x128xbf16, #tpu.memory_space<vmem>>, %arg4: memref<128x32xf32, #tpu.memory_space<vmem>>, %arg5: memref<1x32xf32, #tpu.memory_space<vmem>>, %arg6: memref<32x128xf32, #tpu.memory_space<vmem>>, %arg7: memref<1x128xf32, #tpu.memory_space<vmem>>, %arg8: memref<128x128xbf16, #tpu.memory_space<vmem>>, %arg9: memref<128x128xbf16, #tpu.memory_space<vmem>>) attributes {dimension_semantics = [#tpu.dimension_semantics<parallel>], iteration_bounds = array<i64: 2>, scalar_prefetch = 0 : i64, scratch_operands = 0 : i64, tpu.core_type = #tpu.core_type<tc>, window_params = [{transform_indices = @transform_0, window_bounds = array<i64: 128, 256>}, {pipeline_mode = #tpu.pipeline_mode<synchronous>, transform_indices = @transform_1, window_bounds = array<i64: 256, 128>}, {pipeline_mode = #tpu.pipeline_mode<synchronous>, transform_indices = @transform_2, window_bounds = array<i64: 256, 128>}, {pipeline_mode = #tpu.pipeline_mode<synchronous>, transform_indices = @transform_3, window_bounds = array<i64: 128, 32>}, {pipeline_mode = #tpu.pipeline_mode<synchronous>, transform_indices = @transform_4, window_bounds = array<i64: 1, 32>}, {pipeline_mode = #tpu.pipeline_mode<synchronous>, transform_indices = @transform_5, window_bounds = array<i64: 32, 128>}, {pipeline_mode = #tpu.pipeline_mode<synchronous>, transform_indices = @transform_6, window_bounds = array<i64: 1, 128>}, {transform_indices = @transform_7, window_bounds = array<i64: 128, 128>}, {transform_indices = @transform_8, window_bounds = array<i64: 128, 128>}]} {
    %c0 = arith.constant 0 : index
    %c0_0 = arith.constant 0 : index
    %0 = vector.load %arg1[%c0, %c0_0] : memref<128x256xbf16, #tpu.memory_space<vmem>>, vector<128x256xbf16>
    %c0_1 = arith.constant 0 : index
    %c0_2 = arith.constant 0 : index
    %1 = vector.load %arg2[%c0_1, %c0_2] : memref<256x128xbf16, #tpu.memory_space<vmem>>, vector<256x128xbf16>
    %cst = arith.constant dense<0.000000e+00> : vector<128x128xf32>
    %2 = tpu.matmul %0, %1, %cst {dimension_numbers = #tpu.dot_dimension_numbers<[1], [0], [0], [1], [0, 0, 1, 1], [], []>} : vector<128x256xbf16>, vector<256x128xbf16>, vector<128x128xf32> -> vector<128x128xf32>
    %c0_3 = arith.constant 0 : index
    %c0_4 = arith.constant 0 : index
    %3 = vector.load %arg3[%c0_3, %c0_4] : memref<256x128xbf16, #tpu.memory_space<vmem>>, vector<256x128xbf16>
    %cst_5 = arith.constant dense<0.000000e+00> : vector<128x128xf32>
    %4 = tpu.matmul %0, %3, %cst_5 {dimension_numbers = #tpu.dot_dimension_numbers<[1], [0], [0], [1], [0, 0, 1, 1], [], []>} : vector<128x256xbf16>, vector<256x128xbf16>, vector<128x128xf32> -> vector<128x128xf32>
    %5 = arith.addf %2, %4 : vector<128x128xf32>
    %6 = vector.extract_strided_slice %5 {offsets = [0, 8], sizes = [128, 1], strides = [1, 1]} : vector<128x128xf32> to vector<128x1xf32>
    %c128_i32 = arith.constant 128 : i32
    %7 = arith.muli %arg0, %c128_i32 : i32
    %8 = tpu.assume_multiple %7, 128 : i32
    %9 = arith.index_cast %8 : i32 to index
    %c0_6 = arith.constant 0 : index
    %10 = vector.load %arg2[%9, %c0_6] : memref<256x128xbf16, #tpu.memory_space<vmem>>, vector<128x128xbf16>
    %11 = arith.extf %10 : vector<128x128xbf16> to vector<128x128xf32>
    %12 = arith.index_cast %8 : i32 to index
    %c0_7 = arith.constant 0 : index
    %13 = vector.load %arg3[%12, %c0_7] : memref<256x128xbf16, #tpu.memory_space<vmem>>, vector<128x128xbf16>
    %14 = arith.extf %13 : vector<128x128xbf16> to vector<128x128xf32>
    %15 = arith.addf %11, %14 : vector<128x128xf32>
    %cst_8 = arith.constant 1.000000e+00 : f32
    %16 = vector.broadcast %cst_8 : f32 to vector<128x1xf32>
    %17 = arith.addf %6, %16 : vector<128x1xf32>
    %18 = tpu.reciprocal %17 : vector<128x1xf32> -> vector<128x1xf32>
    %19 = arith.addf %5, %15 : vector<128x128xf32>
    %20 = vector.broadcast %18 : vector<128x1xf32> to vector<128x128xf32>
    %21 = arith.mulf %19, %20 : vector<128x128xf32>
    %c0_9 = arith.constant 0 : index
    %c0_10 = arith.constant 0 : index
    %22 = vector.load %arg4[%c0_9, %c0_10] : memref<128x32xf32, #tpu.memory_space<vmem>>, vector<128x32xf32>
    %cst_11 = arith.constant dense<0.000000e+00> : vector<128x32xf32>
    %23 = tpu.matmul %21, %22, %cst_11 {dimension_numbers = #tpu.dot_dimension_numbers<[1], [0], [0], [1], [0, 0, 1, 1], [], []>} : vector<128x128xf32>, vector<128x32xf32>, vector<128x32xf32> -> vector<128x32xf32>
    %c0_12 = arith.constant 0 : index
    %c0_13 = arith.constant 0 : index
    %24 = vector.load %arg5[%c0_12, %c0_13] : memref<1x32xf32, #tpu.memory_space<vmem>>, vector<1x32xf32>
    %25 = vector.broadcast %24 : vector<1x32xf32> to vector<128x32xf32>
    %26 = arith.addf %23, %25 : vector<128x32xf32>
    %cst_14 = arith.constant 0.000000e+00 : f32
    %27 = vector.broadcast %cst_14 : f32 to vector<128x32xf32>
    %28 = arith.maximumf %26, %27 : vector<128x32xf32>
    %c0_15 = arith.constant 0 : index
    %c0_16 = arith.constant 0 : index
    %29 = vector.load %arg6[%c0_15, %c0_16] : memref<32x128xf32, #tpu.memory_space<vmem>>, vector<32x128xf32>
    %cst_17 = arith.constant dense<0.000000e+00> : vector<128x128xf32>
    %30 = tpu.matmul %28, %29, %cst_17 {dimension_numbers = #tpu.dot_dimension_numbers<[1], [0], [0], [1], [0, 0, 1, 1], [], []>} : vector<128x32xf32>, vector<32x128xf32>, vector<128x128xf32> -> vector<128x128xf32>
    %c0_18 = arith.constant 0 : index
    %c0_19 = arith.constant 0 : index
    %31 = vector.load %arg7[%c0_18, %c0_19] : memref<1x128xf32, #tpu.memory_space<vmem>>, vector<1x128xf32>
    %32 = vector.broadcast %31 : vector<1x128xf32> to vector<128x128xf32>
    %33 = arith.addf %30, %32 : vector<128x128xf32>
    %34 = arith.truncf %33 : vector<128x128xf32> to vector<128x128xbf16>
    %c0_20 = arith.constant 0 : index
    %c0_21 = arith.constant 0 : index
    %35 = vector.load %arg8[%c0_20, %c0_21] : memref<128x128xbf16, #tpu.memory_space<vmem>>, vector<128x128xbf16>
    tpu.vector_store %arg8[%c0_20, %c0_21], %34 {strides = array<i32>} : memref<128x128xbf16, #tpu.memory_space<vmem>>, vector<128x128xbf16>,
    %36 = arith.extf %34 : vector<128x128xbf16> to vector<128x128xf32>
    %37 = arith.subf %33, %36 : vector<128x128xf32>
    %38 = arith.truncf %37 : vector<128x128xf32> to vector<128x128xbf16>
    %c0_22 = arith.constant 0 : index
    %c0_23 = arith.constant 0 : index
    %39 = vector.load %arg9[%c0_22, %c0_23] : memref<128x128xbf16, #tpu.memory_space<vmem>>, vector<128x128xbf16>
    tpu.vector_store %arg9[%c0_22, %c0_23], %38 {strides = array<i32>} : memref<128x128xbf16, #tpu.memory_space<vmem>>, vector<128x128xbf16>,
    return
  }
  func.func @transform_0(%arg0: i32) -> (i32, i32) {
    %c0_i32 = arith.constant 0 : i32
    %c0_i32_0 = arith.constant 0 : i32
    return %arg0, %c0_i32 : i32, i32
  }
  func.func @transform_1(%arg0: i32) -> (i32, i32) {
    %c0_i32 = arith.constant 0 : i32
    %c0_i32_0 = arith.constant 0 : i32
    %c0_i32_1 = arith.constant 0 : i32
    return %c0_i32, %c0_i32_0 : i32, i32
  }
  func.func @transform_2(%arg0: i32) -> (i32, i32) {
    %c0_i32 = arith.constant 0 : i32
    %c0_i32_0 = arith.constant 0 : i32
    %c0_i32_1 = arith.constant 0 : i32
    return %c0_i32, %c0_i32_0 : i32, i32
  }
  func.func @transform_3(%arg0: i32) -> (i32, i32) {
    %c0_i32 = arith.constant 0 : i32
    %c0_i32_0 = arith.constant 0 : i32
    %c0_i32_1 = arith.constant 0 : i32
    return %c0_i32, %c0_i32_0 : i32, i32
  }
  func.func @transform_4(%arg0: i32) -> (i32, i32) {
    %c0_i32 = arith.constant 0 : i32
    %c0_i32_0 = arith.constant 0 : i32
    %c0_i32_1 = arith.constant 0 : i32
    return %c0_i32, %c0_i32_0 : i32, i32
  }
  func.func @transform_5(%arg0: i32) -> (i32, i32) {
    %c0_i32 = arith.constant 0 : i32
    %c0_i32_0 = arith.constant 0 : i32
    %c0_i32_1 = arith.constant 0 : i32
    return %c0_i32, %c0_i32_0 : i32, i32
  }
  func.func @transform_6(%arg0: i32) -> (i32, i32) {
    %c0_i32 = arith.constant 0 : i32
    %c0_i32_0 = arith.constant 0 : i32
    %c0_i32_1 = arith.constant 0 : i32
    return %c0_i32, %c0_i32_0 : i32, i32
  }
  func.func @transform_7(%arg0: i32) -> (i32, i32) {
    %c0_i32 = arith.constant 0 : i32
    %c0_i32_0 = arith.constant 0 : i32
    return %arg0, %c0_i32 : i32, i32
  }
  func.func @transform_8(%arg0: i32) -> (i32, i32) {
    %c0_i32 = arith.constant 0 : i32
    %c0_i32_0 = arith.constant 0 : i32
    return %arg0, %c0_i32 : i32, i32
  }
}

</mosaic_0001>

<bundles_post_ra>
// kernel: tpu_custom_call.1
= control target key start
LH: loop header
LB: loop body
LE: loop exit
PB: predicated region body
PF: predicated region fallthrough
CT: control target
= control target key end

     0   :  { %14 = vsyncpa [#allocation3], 0  ;;  %s3403_s0 = inlined_call_operand.hbm [shape: bf16[256,256], index: 0, kind: input, shape index: {}]   ;;  %s3404_s1 = inlined_call_operand.vmem [shape: bf16[256,128], index: 1, kind: input, shape index: {}]   ;;  %s3405_s2 = inlined_call_operand.hbm [shape: bf16[256,128], index: 2, kind: input, shape index: {}]   ;;  %s3406_s3 = inlined_call_operand.vmem [shape: f32[128,32], index: 3, kind: input, shape index: {}]   ;;  %s3407_s4 = inlined_call_operand.vmem [shape: f32[1,32], index: 4, kind: input, shape index: {}]   ;;  %s3408_s5 = inlined_call_operand.vmem [shape: f32[32,128], index: 5, kind: input, shape index: {}]   ;;  %s3409_s6 = inlined_call_operand.vmem [shape: f32[1,128], index: 6, kind: input, shape index: {}]   ;;  %s3410_s7 = inlined_call_operand.hbm [shape: bf16[256,128], index: 7, kind: output, shape index: {0}]   ;;  %s3411_s8 = inlined_call_operand.hbm [shape: bf16[256,128], index: 8, kind: output, shape index: {1}]  }
   0x1   :  { %16 = vsyncpa [#allocation3 + $0x1], 0 }
   0x2   :  { %17 = vsyncpa [#allocation6], 0 }
   0x3   :  { %18 = vsyncpa [#allocation4], 0 }
   0x4   :  { %20 = vsyncpa [#allocation4 + $0x1], 0 }
   0x5   :  { %21 = vsyncpa [#allocation9], 0 }
   0x6   :  { %23 = vsyncpa [#allocation9 + $0x1], 0  ;;  %s2882_s27 = smov 0   ;;  %s2884_s28 = smov 0  }
   0x7   :  { %s2886_s29 = smov 0   ;;  %s2888_s30 = smov 0  }
   0x8 LB: > { %s2903_s9 = sadd.s32 4294967295, %s2824_s30   ;;  %s1867_s10 = sadd.s32 4294967294, %s2824_s30   ;;  %s2824_s30 = sphi %s2888_s30, %s3432_s30   ;;  %s2820_s29 = sphi %s2886_s29, %s3435_s29   ;;  %s2816_s28 = sphi %s2884_s28, %s3434_s28   ;;  %s2812_s27 = sphi %s2882_s27, %s3433_s27  }
   0x9   : > { %p49_p0 = scmp.ne.s32.totalorder %s2816_s28, %s2812_s27  ;;  %p3412_p1 = scmp.eq.s32.totalorder %s2903_s9, 0 }
   0xa   : > { %p205_p3 = scmp.eq.s32.totalorder %s1867_s10, 1  ;;  %p1868_p5 = scmp.ge.s32.totalorder %s2824_s30, 1 }
   0xb   : > { %p2912_p4 = por %p3412_p1, %p49_p0  ;;  %p238_p7 = scmp.lt.s32.totalorder %s2824_s30, 3 }
   0xc   : > { %p2917_p6 = por %p205_p3, %p49_p0  ;;  %s2826_s14 = smov [#allocation5]  }
   0xd   : > { %s3417_s11 = scalar_select %p2912_p4, 1, 0 }
   0xe   : > { %s3418_s12 = scalar_select %p2917_p6, 1, 0 }
   0xf   : > { %p2922_p8 = pnand %p1868_p5, %p238_p7  ;;  %s253_s15 = sshll.u32 %s2826_s14, 4  ;;  %s2926_s15 = int_to_ptr.vmem [resolvable:$true] %s253_s15 }
  0x10   : > { %s2938_s17 = sadd.s32 1, %s2824_s30   ;;  %s36_s18 = sadd.s32 1, %s2820_s29 }
  0x11   : > { %s3419_s13 = scalar_select %p2922_p8, 1, 0 }
  0x12   : > { %p2515_p9 = pneg %p2922_p8  ;;  %3421 = sst [smem:[#allocation14_spill]] %s2938_s17 }
  0x13   : > { %s33_s19 = ssub.s32 %s2824_s30, %s2938_s17  ;;  %s2664_s22 = scalar_lea.hbm %s3405_s2, 2048 }
  0x14   : > { %p2933_p11 = pnand %p2515_p9, %p3412_p1  ;;  %p2665_p12 = scmp.ne.s32.totalorder %s3405_s2, %s2664_s22 }
  0x15   : > { %p2671_p5 = scmp.lt.u32.totalorder %s2664_s22, %s3405_s2 }
  0x16   : > { %p2666_p13 = pneg %p2933_p11 }
  0x18   : > { %p2667_p0 = pnand %p2666_p13, %p2665_p12 }
  0x1a   : > { %p2668_p3 = pneg %p2667_p0 }
  0x1c   : > { %p2673_p7 = pnand %p2671_p5, %p2668_p3 }
  0x1e   : > { %2676 = shalt.err (!%p2673_p7)
}
  0x1f   : > { %s2677_s10 = scalar_lea.vmem %s2926_s15, 2048  ;;  %p2685_p2 = scmp.lt.s32.totalorder %s2926_s15, %s2926_s15 }
  0x20   : > { %p2678_p9 = scmp.ne.s32.totalorder %s2926_s15, %s2677_s10  ;;  %p2686_p6 = scmp.lt.s32.totalorder %s2677_s10, %s2677_s10 }
  0x22   : > { %p2680_p10 = pnand %p2678_p9, %p2666_p13  ;;  %p2687_p4 = por %p2686_p6, %p2685_p2 }
  0x24   : > { %p2681_p1 = pneg %p2680_p10 }
  0x26   : > { %p2688_p8 = pnand %p2687_p4, %p2681_p1 }
  0x28   : > { %2691 = shalt.err (!%p2688_p8)
}
  0x29   : > { %s2827_s14 = smov 64   ;;  %s2828_s20 = smov 4  }
  0x2a   : > { %2518 = dma.hbm_to_vmem [thread:$0]  (!%p2933_p11), %s3405_s2, 2048, %s2926_s15, [#allocation6], %s2827_s14, %s2827_s14, %s2828_s20  }
  0x2b   : > { %p34_p2 = scmp.eq.s32.totalorder %s33_s19, 0  ;;  %p43_p1 = scmp.ne.s32.totalorder %s2820_s29, %s2816_s28 }
  0x2c   : > { %p44_p4 = scmp.eq.s32.totalorder %s2824_s30, 0  ;;  %p2531_p6 = scmp.lt.s32.totalorder %s2824_s30, 2 }
  0x2d   : > { %s2969_s23 = scalar_select %p34_p2, %s2820_s29, %s36_s18  }
  0x2e   : > { %p45_p8 = por %p44_p4, %p43_p1  ;;  %p3422_p10 = scmp.eq.s32.totalorder %s2903_s9, 1 }
  0x2f   : > { %s279_s25 = sand.u32 1, %s2820_s29   ;;  %s1990_s26 = sshll.u32 %s2824_s30, 11 }
  0x30   : > { %p2973_p12 = por %p3422_p10, %p43_p1  ;;  %s1871_s10 = sshll.u32 %s279_s25, 7 }
  0x31   : > { %s2982_s21 = scalar_lea.hbm %s3403_s0, %s1990_s26  ;;  %s283_s15 = scalar_lea.vmem [#allocation2], %s1871_s10 }
  0x32   : > { %s291_s18 = sshll.u32 %s283_s15, 4  ;;  %p2984_p11 = pnand %p2531_p6, %p45_p8  ;;  %s2988_s18 = int_to_ptr.vmem [resolvable:$true] %s291_s18 }
  0x33   : > { %s2990_s14 = scalar_lea.sflag [#allocation3], %s279_s25  ;;  %s2692_s20 = scalar_lea.hbm %s2982_s21, 2048 }
  0x34   : > { %p2693_p13 = scmp.ne.s32.totalorder %s2982_s21, %s2692_s20  ;;  %p2694_p0 = pneg %p2984_p11 }
  0x35   : > { %s2697_s26 = scalar_lea.hbm %s3403_s0, 4096  ;;  %p2698_p7 = scmp.lt.u32.totalorder %s2982_s21, %s3403_s0 }
  0x36   : > { %p2695_p3 = pnand %p2694_p0, %p2693_p13  ;;  %p2699_p9 = scmp.lt.u32.totalorder %s2697_s26, %s2692_s20 }
  0x37   : > { %p2701_p1 = scmp.lt.u32.totalorder %s2692_s20, %s2982_s21 }
  0x38   : > { %p2696_p5 = pneg %p2695_p3  ;;  %p2700_p2 = por %p2699_p9, %p2698_p7 }
  0x3a   : > { %p2702_p4 = por %p2701_p1, %p2700_p2 }
  0x3c   : > { %p2703_p6 = pnand %p2702_p4, %p2696_p5 }
  0x3e   : > { %2706 = shalt.err (!%p2703_p6)
}
  0x3f   : > { %s2707_s25 = scalar_lea.vmem %s2988_s18, 2048  ;;  %s2829_s15 = smov [#allocation2]  }
  0x40   : > { %p2708_p8 = scmp.ne.s32.totalorder %s2988_s18, %s2707_s25  ;;  %s2712_s17 = sshll.u32 %s2829_s15, 4  ;;  %s2713_s17 = int_to_ptr.vmem [resolvable:$false] %s2712_s17 }
  0x41   : > { %s2714_s22 = scalar_lea.vmem %s2713_s17, 4096  ;;  %p2715_p3 = scmp.lt.s32.totalorder %s2988_s18, %s2713_s17 }
  0x42   : > { %p2710_p10 = pnand %p2708_p8, %p2694_p0  ;;  %p2716_p7 = scmp.lt.s32.totalorder %s2714_s22, %s2707_s25 }
  0x44   : > { %p2711_p13 = pneg %p2710_p10  ;;  %p2717_p9 = por %p2716_p7, %p2715_p3 }
  0x46   : > { %p2718_p2 = pnand %p2717_p9, %p2711_p13 }
  0x48   : > { %2721 = shalt.err (!%p2718_p2)
}
  0x49   : > { %s2830_s20 = smov 128   ;;  %s2831_s26 = smov 8  }
  0x4a   : > { %2522 = dma.hbm_to_vmem [thread:$0]  (!%p2984_p11), %s2982_s21, 2048, %s2988_s18, %s2990_s14, %s2830_s20, %s2830_s20, %s2831_s26  }
  0x4b   : > { %p3425_p0 = scmp.ne.s32.totalorder %s3419_s13, 0 }
  0x4c   : > { %s3021_s10 = sand.u32 (!%p3425_p0), 1, %s2816_s28   ;;  %p3426_p5 = scmp.ne.s32.totalorder (!%p3425_p0), %s3417_s11, 0 }
  0x4d   : > { %303 = sbr.rel (%p3425_p0) target bundleno = 1015 (0x3f7), region = 48  ;;  %s1876_s16 = sshll.u32 (!%p3425_p0), %s3021_s10, 7 }
  0x4e   : > { %s306_s25 = scalar_lea.sflag (!%p3425_p0), [#allocation3], %s3021_s10  ;;  %s3025_s15 = scalar_lea.vmem (!%p3425_p0), [#allocation2], %s1876_s16 }
  0x54   : > { %2795 = dma.done.wait (%p3426_p5), %s306_s25, 2048  }
  0x55   : > { %2797 = vsyncadd (%p3426_p5), %s306_s25, 4294965248  ;;  %p3427_p11 = scmp.eq.s32.totalorder %s2903_s9, 0 }
  0x57   : > { %2799 = dma.done.wait (%p3427_p11), [#allocation6], 2048   ;;  %p3428_p1 = pmov %p3427_p11 }
  0x58   : > { %v2576_v0 = vld [vmem:[#allocation5 + $0x40] sm:$0xff]   ;;  %v2580_v4 = vld [vmem:[#allocation5 + $0x48] sm:$0xff]   ;;  %v2584_v8 = vld [vmem:[#allocation5 + $0x50] sm:$0xff]   ;;  %v2832_v48 = vmov 8   ;;  %s1928_s14 = sshll.u32 %s2903_s9, 7  ;;  %vm1327_vm0 = vcmask 261120  }
  0x59   : > { %2801 = vsyncadd (%p3428_p1), [#allocation6], 4294965248  ;;  %v2577_v1 = vld [vmem:[%s3404_s1 + $0x40] sm:$0xff]   ;;  %2197 = vmatprep.subr.bf16.mxu0 %v2576_v0  ;;  %v2581_v5 = vld [vmem:[%s3404_s1 + $0x48] sm:$0xff]   ;;  %2574 = vset.pattern.permute.xlu0 %v2832_v48  ;;  %s902_s17 = sshra.s32 %s1928_s14, 3  ;;  %s1714_s19 = scalar_lea.sflag [#allocation4], %s3021_s10 }
  0x5a   : > { %v2578_v2 = vld [vmem:[#allocation5] sm:$0xff]   ;;  %2261 = vmatprep.subr.bf16.mxu1 %v2577_v1  ;;  %v2582_v6 = vld [vmem:[#allocation5 + $0x8] sm:$0xff]   ;;  %v2585_v9 = vld [vmem:[%s3404_s1 + $0x50] sm:$0xff]   ;;  %2575 = vset.pattern.permute.xlu1 %v2832_v48  ;;  %s1929_s22 = sshll.u32 %s902_s17, 2  ;;  %s2833_s14 = smov [#allocation7]  }
  0x5b   : > { %v2579_v3 = vld [vmem:[%s3404_s1] sm:$0xff]   ;;  %2198 = vmatpush3.bf16.msra.mxu0 %v2578_v2  ;;  %v2583_v7 = vld [vmem:[%s3404_s1 + $0x8] sm:$0xff]   ;;  %v2586_v10 = vld [vmem:[#allocation5 + $0x10] sm:$0xff]   ;;  %s3205_s16 = scalar_lea.vmem %s3404_s1, %s1929_s22  ;;  %s3208_s25 = scalar_lea.vmem [#allocation5], %s1929_s22 }
  0x5c   : > { %2262 = vmatpush3.bf16.msra.mxu1 %v2579_v3  ;;  %2199 = vmatprep.subr.bf16.mxu0 %v2580_v4  ;;  %v2587_v11 = vld [vmem:[%s3404_s1 + $0x10] sm:$0xff]   ;;  %v2588_v12 = vld [vmem:[#allocation5 + $0x58] sm:$0xff]   ;;  %v2592_v16 = vld [vmem:[#allocation5 + $0x60] sm:$0xff]   ;;  %s1878_s22 = sshll.u32 %s3021_s10, 6  ;;  %s2726_s17 = sshll.u32 %s2833_s14, 4  ;;  %s2727_s17 = int_to_ptr.vmem [resolvable:$false] %s2726_s17 }
  0x5d   : > { %2263 = vmatprep.subr.bf16.mxu1 %v2581_v5  ;;  %v2589_v13 = vld [vmem:[%s3404_s1 + $0x58] sm:$0xff]   ;;  %v2593_v17 = vld [vmem:[%s3404_s1 + $0x60] sm:$0xff]   ;;  %v2596_v20 = vld [vmem:[#allocation5 + $0x68] sm:$0xff]   ;;  %s3274_s20 = scalar_lea.vmem [#allocation7], %s1878_s22  ;;  %s3279_s26 = scalar_lea.vmem [#allocation8], %s1878_s22 }
  0x5e   : > { %v2590_v14 = vld [vmem:[#allocation5 + $0x18] sm:$0xff]   ;;  %v2594_v18 = vld [vmem:[#allocation5 + $0x20] sm:$0xff]   ;;  %v2597_v21 = vld [vmem:[%s3404_s1 + $0x68] sm:$0xff]   ;;  %s2728_s22 = scalar_lea.vmem %s2727_s17, 2048 }
  0x5f   : > { %2200 = vmatpush3.bf16.msra.mxu0 %v2582_v6  ;;  %v2591_v15 = vld [vmem:[%s3404_s1 + $0x18] sm:$0xff]   ;;  %v2595_v19 = vld [vmem:[%s3404_s1 + $0x20] sm:$0xff]   ;;  %v2598_v22 = vld [vmem:[#allocation5 + $0x28] sm:$0xff]  }
  0x60   : > { %2264 = vmatpush3.bf16.msra.mxu1 %v2583_v7  ;;  %2201 = vmatprep.subr.bf16.mxu0 %v2584_v8  ;;  %v2599_v23 = vld [vmem:[%s3404_s1 + $0x28] sm:$0xff]   ;;  %v2600_v24 = vld [vmem:[#allocation5 + $0x70] sm:$0xff]   ;;  %v2604_v28 = vld [vmem:[#allocation5 + $0x78] sm:$0xff]  }
  0x61   : > { %2265 = vmatprep.subr.bf16.mxu1 %v2585_v9  ;;  %v2601_v25 = vld [vmem:[%s3404_s1 + $0x70] sm:$0xff]   ;;  %v2605_v29 = vld [vmem:[%s3404_s1 + $0x78] sm:$0xff]   ;;  %v2608_v32 = vld [vmem:[%s3025_s15] ss:$8 sps:$4 sm:$0xff]  }
  0x62   : > { %v2602_v26 = vld [vmem:[#allocation5 + $0x30] sm:$0xff]   ;;  %v2606_v30 = vld [vmem:[#allocation5 + $0x38] sm:$0xff]   ;;  %v2610_v33 = vld [vmem:[%s3025_s15 + $0x4] ss:$8 sps:$4 sm:$0xff]  }
  0x63   : > { %2202 = vmatpush3.bf16.msra.mxu0 %v2586_v10  ;;  %v2603_v27 = vld [vmem:[%s3404_s1 + $0x30] sm:$0xff]   ;;  %v2607_v31 = vld [vmem:[%s3404_s1 + $0x38] sm:$0xff]   ;;  %643 = vmatprep.mubr.bf16.mxu0 %v2610_v33  ;;  %v2614_v36 = vld [vmem:[%s3025_s15 + $0x24] ss:$8 sps:$4 sm:$0xff]  }
  0x64   : > { %2266 = vmatpush3.bf16.msra.mxu1 %v2587_v11  ;;  %2203 = vmatprep.subr.bf16.mxu0 %v2588_v12  ;;  %v2611_v34 = vld [vmem:[%s3025_s15 + $0x14] ss:$8 sps:$4 sm:$0xff]   ;;  %v2613_v35 = vld [vmem:[%s3025_s15 + $0x10] ss:$8 sps:$4 sm:$0xff]   ;;  %v2616_v37 = vld [vmem:[%s3025_s15 + $0x20] ss:$8 sps:$4 sm:$0xff]  }
  0x65   : > { %2267 = vmatprep.subr.bf16.mxu1 %v2589_v13  ;;  %836 = vmatprep.mubr.bf16.mxu1 %v2610_v33  ;;  %v2617_v38 = vld [vmem:[%s3025_s15 + $0x34] ss:$8 sps:$4 sm:$0xff]   ;;  %v2619_v39 = vld [vmem:[%s3025_s15 + $0x30] ss:$8 sps:$4 sm:$0xff]   ;;  %v2620_v40 = vld [vmem:[%s3025_s15 + $0x44] ss:$8 sps:$4 sm:$0xff]  }
  0x66   : > { %v2622_v41 = vld [vmem:[%s3025_s15 + $0x40] ss:$8 sps:$4 sm:$0xff]   ;;  %v2623_v42 = vld [vmem:[%s3025_s15 + $0x54] ss:$8 sps:$4 sm:$0xff]   ;;  %v2625_v43 = vld [vmem:[%s3025_s15 + $0x50] ss:$8 sps:$4 sm:$0xff]  }
  0x67   : > { %2204 = vmatpush3.bf16.msra.mxu0 %v2590_v14  ;;  %v2626_v44 = vld [vmem:[%s3025_s15 + $0x64] ss:$8 sps:$4 sm:$0xff]   ;;  %v2628_v45 = vld [vmem:[%s3025_s15 + $0x60] ss:$8 sps:$4 sm:$0xff]   ;;  %v2629_v46 = vld [vmem:[%s3025_s15 + $0x74] ss:$8 sps:$4 sm:$0xff]  }
  0x68   : > { %2268 = vmatpush3.bf16.msra.mxu1 %v2591_v15  ;;  %2205 = vmatprep.subr.bf16.mxu0 %v2592_v16  ;;  %v2631_v47 = vld [vmem:[%s3025_s15 + $0x70] ss:$8 sps:$4 sm:$0xff]   ;;  %v1132_v49 = vld [vmem:[%s3406_s3] sm:$0xff]  ;;  %v1133_v50 = vld [vmem:[%s3406_s3 + $0x8] sm:$0xff] }
  0x69   : > { %2269 = vmatprep.subr.bf16.mxu1 %v2593_v17  ;;  %v1134_v51 = vld [vmem:[%s3406_s3 + $0x10] sm:$0xff]  ;;  %v2465_v52 = vpack.c.bf16 %v1133_v50, %v1132_v49  ;;  %v1135_v53 = vld [vmem:[%s3406_s3 + $0x18] sm:$0xff]  ;;  %v1136_v55 = vld [vmem:[%s3406_s3 + $0x20] sm:$0xff] }
  0x6a   : > { %v2469_v54 = vpack.c.bf16 %v1135_v53, %v1134_v51  ;;  %v1137_v56 = vld [vmem:[%s3406_s3 + $0x28] sm:$0xff]  ;;  %v1138_v58 = vld [vmem:[%s3406_s3 + $0x30] sm:$0xff]  ;;  %v1139_v59 = vld [vmem:[%s3406_s3 + $0x38] sm:$0xff] }
  0x6b   : > { %2206 = vmatpush3.bf16.msra.mxu0 %v2594_v18  ;;  %v2473_v57 = vpack.c.bf16 %v1137_v56, %v1136_v55  ;;  %v2477_v60 = vpack.c.bf16 %v1139_v59, %v1138_v58  ;;  %v1140_v61 = vld [vmem:[%s3406_s3 + $0x40] sm:$0xff]  ;;  %v1141_v62 = vld [vmem:[%s3406_s3 + $0x48] sm:$0xff]  ;;  %v1142_v0 = vld [vmem:[%s3406_s3 + $0x50] sm:$0xff] }
  0x6c   : > { %2270 = vmatpush3.bf16.msra.mxu1 %v2595_v19  ;;  %2207 = vmatprep.subr.bf16.mxu0 %v2596_v20  ;;  %v2481_v63 = vpack.c.bf16 %v1141_v62, %v1140_v61  ;;  %v1143_v1 = vld [vmem:[%s3406_s3 + $0x58] sm:$0xff]  ;;  %v1144_v3 = vld [vmem:[%s3406_s3 + $0x60] sm:$0xff]  ;;  %v1145_v4 = vld [vmem:[%s3406_s3 + $0x68] sm:$0xff] }
  0x6d   : > { %2271 = vmatprep.subr.bf16.mxu1 %v2597_v21  ;;  %v2485_v2 = vpack.c.bf16 %v1143_v1, %v1142_v0  ;;  %v2489_v5 = vpack.c.bf16 %v1145_v4, %v1144_v3  ;;  %v1147_v48 = vld [vmem:[%s3406_s3 + $0x78] sm:$0xff] }
  0x6f   : > { %2208 = vmatpush3.bf16.msra.mxu0 %v2598_v22 }
  0x70   : > { %2272 = vmatpush3.bf16.msra.mxu1 %v2599_v23  ;;  %2209 = vmatprep.subr.bf16.mxu0 %v2600_v24 }
  0x71   : > { %2273 = vmatprep.subr.bf16.mxu1 %v2601_v25 }
  0x73   : > { %2210 = vmatpush3.bf16.msra.mxu0 %v2602_v26 }
  0x74   : > { %2274 = vmatpush3.bf16.msra.mxu1 %v2603_v27  ;;  %2211 = vmatprep.subr.bf16.mxu0 %v2604_v28 }
  0x75   : > { %2275 = vmatprep.subr.bf16.mxu1 %v2605_v29 }
  0x77   : > { %2212 = vmatpush3.bf16.msra.mxu0 %v2606_v30 }
  0x78   : > { %2276 = vmatpush3.bf16.msra.mxu1 %v2607_v31  ;;  %2466 = vmatprep.subr.bf16.mxu0 %v2465_v52 }
  0x7a   : > { %644 = vmatmul.mubr.bf16.vlgmr.msra.gmra.mrb[0].mxu0 %v2608_v32 }
  0x7b   : > { %837 = vmatmul.mubr.bf16.vlgmr.msra.gmra.mrb[0].mxu1 %v2608_v32  ;;  %651 = vmatprep.mubr.bf16.mxu0 %v2611_v34 }
  0x7c   : > { %844 = vmatprep.mubr.bf16.mxu1 %v2611_v34  ;;  %2468 = vmatpush3.bf16.msra.mxu0 %v2465_v52 }
  0x7d   : > { %2470 = vmatprep.subr.bf16.mxu0 %v2469_v54 }
  0x80   : > { %2472 = vmatpush3.bf16.msra.mxu0 %v2469_v54 }
  0x81   : > { %2474 = vmatprep.subr.bf16.mxu0 %v2473_v57 }
  0x82   : > { %652 = vmatmul.mubr.bf16.gmra.mrb[4].mxu0 %v2613_v35 }
  0x83   : > { %845 = vmatmul.mubr.bf16.gmra.mrb[4].mxu1 %v2613_v35  ;;  %659 = vmatprep.mubr.bf16.mxu0 %v2614_v36 }
  0x84   : > { %852 = vmatprep.mubr.bf16.mxu1 %v2614_v36  ;;  %2476 = vmatpush3.bf16.msra.mxu0 %v2473_v57 }
  0x85   : > { %2478 = vmatprep.subr.bf16.mxu0 %v2477_v60 }
  0x88   : > { %2480 = vmatpush3.bf16.msra.mxu0 %v2477_v60 }
  0x89   : > { %2482 = vmatprep.subr.bf16.mxu0 %v2481_v63 }
  0x8a   : > { %660 = vmatmul.mubr.bf16.gmra.mrb[8].mxu0 %v2616_v37 }
  0x8b   : > { %853 = vmatmul.mubr.bf16.gmra.mrb[8].mxu1 %v2616_v37  ;;  %667 = vmatprep.mubr.bf16.mxu0 %v2617_v38 }
  0x8c   : > { %860 = vmatprep.mubr.bf16.mxu1 %v2617_v38  ;;  %2484 = vmatpush3.bf16.msra.mxu0 %v2481_v63 }
  0x8d   : > { %2486 = vmatprep.subr.bf16.mxu0 %v2485_v2 }
  0x90   : > { %2488 = vmatpush3.bf16.msra.mxu0 %v2485_v2 }
  0x91   : > { %2490 = vmatprep.subr.bf16.mxu0 %v2489_v5 }
  0x92   : > { %668 = vmatmul.mubr.bf16.gmra.mrb[12].mxu0 %v2619_v39 }
  0x93   : > { %861 = vmatmul.mubr.bf16.gmra.mrb[12].mxu1 %v2619_v39  ;;  %675 = vmatprep.mubr.bf16.mxu0 %v2620_v40 }
  0x94   : > { %868 = vmatprep.mubr.bf16.mxu1 %v2620_v40  ;;  %2492 = vmatpush3.bf16.msra.mxu0 %v2489_v5 }
  0x9a   : > { %676 = vmatmul.mubr.bf16.gmra.mrb[16].mxu0 %v2622_v41 }
  0x9b   : > { %869 = vmatmul.mubr.bf16.gmra.mrb[16].mxu1 %v2622_v41  ;;  %683 = vmatprep.mubr.bf16.mxu0 %v2623_v42 }
  0x9c   : > { %876 = vmatprep.mubr.bf16.mxu1 %v2623_v42 }
  0xa2   : > { %684 = vmatmul.mubr.bf16.gmra.mrb[20].mxu0 %v2625_v43 }
  0xa3   : > { %877 = vmatmul.mubr.bf16.gmra.mrb[20].mxu1 %v2625_v43  ;;  %691 = vmatprep.mubr.bf16.mxu0 %v2626_v44 }
  0xa4   : > { %884 = vmatprep.mubr.bf16.mxu1 %v2626_v44 }
  0xaa   : > { %692 = vmatmul.mubr.bf16.gmra.mrb[24].mxu0 %v2628_v45 }
  0xab   : > { %885 = vmatmul.mubr.bf16.gmra.mrb[24].mxu1 %v2628_v45  ;;  %699 = vmatprep.mubr.bf16.mxu0 %v2629_v46 }
  0xac   : > { %892 = vmatprep.mubr.bf16.mxu1 %v2629_v46 }
  0xb2   : > { %700 = vmatmul.mubr.bf16.gmra.mrb[28].mxu0 %v2631_v47 }
  0xb3   : > { %893 = vmatmul.mubr.bf16.gmra.mrb[28].mxu1 %v2631_v47  ;;  %v1146_v47 = vld [vmem:[%s3406_s3 + $0x70] sm:$0xff] }
  0xb4   : > { %v2493_v51 = vpack.c.bf16 %v1147_v48, %v1146_v47 }
  0xb6   : > { %2494 = vmatprep.subr.bf16.mxu0 %v2493_v51 }
  0xb7   : > { %2496 = vmatpush3.bf16.msra.mxu0 %v2493_v51 }
 0x14d   : > { %v2213_v6 = vpop.f32.mrb[0].mxu0 }
 0x14e   : > { %v2277_v7 = vpop.f32.mrb[0].mxu1  ;;  %v2214_v8 = vpop.f32.mrb[1].mxu0 }
 0x14f   : > { %v2278_v9 = vpop.f32.mrb[1].mxu1  ;;  %v2215_v10 = vadd.f32 %v2214_v8, %v2213_v6  ;;  %v2216_v12 = vpop.f32.mrb[2].mxu0 }
 0x150   : > { %v2279_v11 = vadd.f32 %v2278_v9, %v2277_v7  ;;  %v2280_v13 = vpop.f32.mrb[2].mxu1  ;;  %v2217_v14 = vpop.f32.mrb[3].mxu0 }
 0x151   : > { %v2281_v15 = vpop.f32.mrb[3].mxu1  ;;  %v2218_v17 = vadd.f32 %v2217_v14, %v2216_v12 }
 0x152   : > { %v3141_v16 = vadd.f32 %v2279_v11, %v2215_v10  ;;  %v2282_v18 = vadd.f32 %v2281_v15, %v2280_v13 }
 0x154   : > { %v988_v19 = vadd.f32 1.0, %v3141_v16  ;;  %v3144_v20 = vadd.f32 %v2282_v18, %v2218_v17 }
 0x155   : > { %v2219_v22 = vpop.f32.mrb[4].mxu0 }
 0x156   : > { %2632 = vrcp.f32 %v988_v19  ;;  %v989_v21 = vadd.f32 1.0, %v3144_v20  ;;  %v2283_v23 = vpop.f32.mrb[4].mxu1  ;;  %v2220_v24 = vpop.f32.mrb[5].mxu0 }
 0x157   : > { %v2284_v25 = vpop.f32.mrb[5].mxu1  ;;  %v2221_v26 = vadd.f32 %v2220_v24, %v2219_v22  ;;  %v2222_v28 = vpop.f32.mrb[6].mxu0 }
 0x158   : > { %v2285_v27 = vadd.f32 %v2284_v25, %v2283_v23  ;;  %v2286_v29 = vpop.f32.mrb[6].mxu1  ;;  %v2223_v30 = vpop.f32.mrb[7].mxu0  ;;  %2634 = vrcp.f32 %v989_v21 }
 0x159   : > { %v2287_v31 = vpop.f32.mrb[7].mxu1  ;;  %v2224_v33 = vadd.f32 %v2223_v30, %v2222_v28 }
 0x15a   : > { %v3147_v32 = vadd.f32 %v2285_v27, %v2221_v26  ;;  %v2288_v34 = vadd.f32 %v2287_v31, %v2286_v29 }
 0x15c   : > { %v990_v35 = vadd.f32 1.0, %v3147_v32  ;;  %v3150_v36 = vadd.f32 %v2288_v34, %v2224_v33 }
 0x15d   : > { %v2225_v38 = vpop.f32.mrb[8].mxu0 }
 0x15e   : > { %2636 = vrcp.f32 %v990_v35  ;;  %v991_v37 = vadd.f32 1.0, %v3150_v36  ;;  %v2289_v39 = vpop.f32.mrb[8].mxu1  ;;  %v2226_v40 = vpop.f32.mrb[9].mxu0 }
 0x15f   : > { %v2290_v41 = vpop.f32.mrb[9].mxu1  ;;  %v2227_v43 = vadd.f32 %v2226_v40, %v2225_v38  ;;  %v2228_v45 = vpop.f32.mrb[10].mxu0 }
 0x160   : > { %v2633_v42 = vpop.eup %2632  ;;  %v2291_v44 = vadd.f32 %v2290_v41, %v2289_v39  ;;  %v2292_v46 = vpop.f32.mrb[10].mxu1  ;;  %2638 = vrcp.f32 %v991_v37 }
 0x161   : > { %v2229_v49 = vpop.f32.mrb[11].mxu0  ;;  %v2293_v50 = vpop.f32.mrb[11].mxu1  ;;  %1038 = vperm.xlu0 %2574, %v2633_v42  }
 0x162   : > { %v3159_v52 = vadd.f32 %v2291_v44, %v2227_v43  ;;  %v2230_v53 = vadd.f32 %v2229_v49, %v2228_v45  ;;  %v2294_v54 = vadd.f32 %v2293_v50, %v2292_v46  ;;  %v2635_v55 = vpop.eup %2634 }
 0x164   : > { %v992_v56 = vadd.f32 1.0, %v3159_v52  ;;  %v3162_v57 = vadd.f32 %v2294_v54, %v2230_v53 }
 0x165   : > { %1043 = vperm.xlu0 %2574, %v2635_v55   ;;  %v2231_v59 = vpop.f32.mrb[12].mxu0 }
 0x166   : > { %2640 = vrcp.f32 %v992_v56  ;;  %v993_v58 = vadd.f32 1.0, %v3162_v57  ;;  %v2295_v60 = vpop.f32.mrb[12].mxu1  ;;  %v2232_v61 = vpop.f32.mrb[13].mxu0 }
 0x167   : > { %v2296_v62 = vpop.f32.mrb[13].mxu1  ;;  %v2233_v0 = vadd.f32 %v2232_v61, %v2231_v59  ;;  %v2234_v2 = vpop.f32.mrb[14].mxu0 }
 0x168   : > { %v2637_v63 = vpop.eup %2636  ;;  %2642 = vrcp.f32 %v993_v58  ;;  %v2297_v1 = vadd.f32 %v2296_v62, %v2295_v60  ;;  %v2298_v3 = vpop.f32.mrb[14].mxu1 }
 0x169   : > { %v2235_v4 = vpop.f32.mrb[15].mxu0  ;;  %v2299_v5 = vpop.f32.mrb[15].mxu1  ;;  %1048 = vperm.xlu1 %2575, %v2637_v63  }
 0x16a   : > { %v3165_v6 = vadd.f32 %v2297_v1, %v2233_v0  ;;  %v2236_v7 = vadd.f32 %v2235_v4, %v2234_v2  ;;  %v2300_v8 = vadd.f32 %v2299_v5, %v2298_v3  ;;  %v2639_v9 = vpop.eup %2638 }
 0x16c   : > { %v994_v10 = vadd.f32 1.0, %v3165_v6  ;;  %v3168_v11 = vadd.f32 %v2300_v8, %v2236_v7 }
 0x16d   : > { %1053 = vperm.xlu1 %2575, %v2639_v9   ;;  %v2237_v13 = vpop.f32.mrb[16].mxu0 }
 0x16e   : > { %2644 = vrcp.f32 %v994_v10  ;;  %v995_v12 = vadd.f32 1.0, %v3168_v11  ;;  %v2301_v14 = vpop.f32.mrb[16].mxu1  ;;  %v2238_v15 = vpop.f32.mrb[17].mxu0 }
 0x16f   : > { %v2302_v17 = vpop.f32.mrb[17].mxu1  ;;  %v2239_v19 = vadd.f32 %v2238_v15, %v2237_v13  ;;  %v2240_v22 = vpop.f32.mrb[18].mxu0 }
 0x170   : > { %v2641_v18 = vpop.eup %2640  ;;  %2646 = vrcp.f32 %v995_v12  ;;  %v2303_v21 = vadd.f32 %v2302_v17, %v2301_v14  ;;  %v2304_v23 = vpop.f32.mrb[18].mxu1 }
 0x171   : > { %v2241_v24 = vpop.f32.mrb[19].mxu0  ;;  %v2305_v25 = vpop.f32.mrb[19].mxu1  ;;  %1058 = vperm.xlu0 %2574, %v2641_v18  }
 0x172   : > { %v2643_v26 = vpop.eup %2642  ;;  %v3171_v27 = vadd.f32 %v2303_v21, %v2239_v19  ;;  %v2242_v28 = vadd.f32 %v2241_v24, %v2240_v22  ;;  %v2306_v29 = vadd.f32 %v2305_v25, %v2304_v23 }
 0x173   : > { %1063 = vperm.xlu1 %2575, %v2643_v26  }
 0x174   : > { %v996_v30 = vadd.f32 1.0, %v3171_v27  ;;  %v3174_v31 = vadd.f32 %v2306_v29, %v2242_v28 }
 0x175   : > { %v2243_v34 = vpop.f32.mrb[20].mxu0 }
 0x176   : > { %2648 = vrcp.f32 %v996_v30  ;;  %v997_v33 = vadd.f32 1.0, %v3174_v31  ;;  %v2307_v35 = vpop.f32.mrb[20].mxu1  ;;  %v2244_v37 = vpop.f32.mrb[21].mxu0 }
 0x177   : > { %v2308_v38 = vpop.f32.mrb[21].mxu1  ;;  %v2245_v40 = vadd.f32 %v2244_v37, %v2243_v34  ;;  %v2246_v42 = vpop.f32.mrb[22].mxu0 }
 0x178   : > { %v2645_v39 = vpop.eup %2644  ;;  %2650 = vrcp.f32 %v997_v33  ;;  %v2309_v41 = vadd.f32 %v2308_v38, %v2307_v35  ;;  %v2310_v43 = vpop.f32.mrb[22].mxu1 }
 0x179   : > { %v2247_v44 = vpop.f32.mrb[23].mxu0  ;;  %v2311_v45 = vpop.f32.mrb[23].mxu1  ;;  %1068 = vperm.xlu0 %2574, %v2645_v39   ;;  %v1316_v39 = vld [vmem:[%s3408_s5] sm:$0xff] }
 0x17a   : > { %v2647_v46 = vpop.eup %2646  ;;  %v3177_v47 = vadd.f32 %v2309_v41, %v2245_v40  ;;  %v2248_v48 = vadd.f32 %v2247_v44, %v2246_v42  ;;  %v2312_v49 = vadd.f32 %v2311_v45, %v2310_v43  ;;  %v1317_v40 = vld [vmem:[%s3408_s5 + $0x8] sm:$0xff]  ;;  %v2026_v42 = vld [vmem:[%s3205_s16] sm:$0xff]  }
 0x17b   : > { %1073 = vperm.xlu1 %2575, %v2647_v46   ;;  %v2497_v41 = vpack.c.bf16 %v1317_v40, %v1316_v39  ;;  %v2058_v43 = vld [vmem:[%s3208_s25] sm:$0xff]   ;;  %v2027_v44 = vunpack.c.l.bf16 %v2026_v42 }
 0x17c   : > { %v998_v50 = vadd.f32 1.0, %v3177_v47  ;;  %v3180_v51 = vadd.f32 %v2312_v49, %v2248_v48  ;;  %v2059_v45 = vunpack.c.l.bf16 %v2058_v43  ;;  %v2028_v48 = vunpack.c.h.bf16 %v2026_v42  ;;  %v2172_v39 = vld [vmem:[%s3205_s16 + $0x20] sm:$0xff]  }
 0x17d   : > { %v2249_v54 = vpop.f32.mrb[24].mxu0  ;;  %2498 = vmatprep.subr.bf16.mxu1 %v2497_v41  ;;  %v2060_v49 = vunpack.c.h.bf16 %v2058_v43  ;;  %v2179_v40 = vld [vmem:[%s3208_s25 + $0x20] sm:$0xff]   ;;  %v2043_v42 = vunpack.c.l.bf16 %v2172_v39 }
 0x17e   : > { %2652 = vrcp.f32 %v998_v50  ;;  %v999_v53 = vadd.f32 1.0, %v3180_v51  ;;  %v2313_v55 = vpop.f32.mrb[24].mxu1  ;;  %v2250_v56 = vpop.f32.mrb[25].mxu0  ;;  %2500 = vmatpush3.bf16.msra.mxu1 %v2497_v41  ;;  %v972_v46 = vadd.f32 %v2059_v45, %v2027_v44  ;;  %v2169_v50 = vld [vmem:[%s3205_s16 + $0x8] sm:$0xff]   ;;  %v2075_v43 = vunpack.c.l.bf16 %v2179_v40 }
 0x17f   : > { %v2314_v58 = vpop.f32.mrb[25].mxu1  ;;  %v2251_v60 = vadd.f32 %v2250_v56, %v2249_v54  ;;  %v2252_v62 = vpop.f32.mrb[26].mxu0  ;;  %v2031_v56 = vunpack.c.l.bf16 %v2169_v50 }
 0x180   : > { %v2649_v59 = vpop.eup %2648  ;;  %2654 = vrcp.f32 %v999_v53  ;;  %v2315_v61 = vadd.f32 %v2314_v58, %v2313_v55  ;;  %v2316_v63 = vpop.f32.mrb[26].mxu1  ;;  %v2176_v53 = vld [vmem:[%s3208_s25 + $0x8] sm:$0xff]   ;;  %v1020_v54 = vadd.f32 %v972_v46, %v3141_v16  ;;  %v973_v55 = vadd.f32 %v2060_v49, %v2028_v48 }
 0x181   : > { %v2253_v0 = vpop.f32.mrb[27].mxu0  ;;  %v2317_v1 = vpop.f32.mrb[27].mxu1  ;;  %1078 = vperm.xlu0 %2574, %v2649_v59   ;;  %v2063_v58 = vunpack.c.l.bf16 %v2176_v53  ;;  %v2044_v46 = vunpack.c.h.bf16 %v2172_v39  ;;  %v2076_v48 = vunpack.c.h.bf16 %v2179_v40 }
 0x182   : > { %v2651_v2 = vpop.eup %2650  ;;  %v3183_v3 = vadd.f32 %v2315_v61, %v2251_v60  ;;  %v2254_v4 = vadd.f32 %v2253_v0, %v2252_v62  ;;  %v2318_v5 = vadd.f32 %v2317_v1, %v2316_v63  ;;  %v1021_v61 = vadd.f32 %v973_v55, %v3144_v20  ;;  %v2180_v55 = vld [vmem:[%s3208_s25 + $0x28] sm:$0xff]  }
 0x183   : > { %1083 = vperm.xlu1 %2575, %v2651_v2   ;;  %v974_v62 = vadd.f32 %v2063_v58, %v2031_v56  ;;  %v2032_v63 = vunpack.c.h.bf16 %v2169_v50  ;;  %v2064_v0 = vunpack.c.h.bf16 %v2176_v53  ;;  %v2170_v2 = vld [vmem:[%s3205_s16 + $0x10] sm:$0xff]   ;;  %v980_v53 = vadd.f32 %v2075_v43, %v2043_v42 }
 0x184   : > { %v1000_v7 = vadd.f32 1.0, %v3183_v3  ;;  %v3186_v8 = vadd.f32 %v2318_v5, %v2254_v4  ;;  %v2177_v4 = vld [vmem:[%s3208_s25 + $0x10] sm:$0xff]   ;;  %v981_v56 = vadd.f32 %v2076_v48, %v2044_v46 }
 0x185   : > { %v2255_v10 = vpop.f32.mrb[28].mxu0  ;;  %v1022_v16 = vadd.f32 %v974_v62, %v3147_v32 }
 0x186   : > { %2656 = vrcp.f32 %v1000_v7  ;;  %v1001_v9 = vadd.f32 1.0, %v3186_v8  ;;  %v2319_v12 = vpop.f32.mrb[28].mxu1  ;;  %v2256_v13 = vpop.f32.mrb[29].mxu0  ;;  %v975_v7 = vadd.f32 %v2064_v0, %v2032_v63  ;;  %v2080_v63 = vunpack.c.h.bf16 %v2180_v55 }
 0x187   : > { %v2320_v14 = vpop.f32.mrb[29].mxu1  ;;  %v2257_v17 = vadd.f32 %v2256_v13, %v2255_v10  ;;  %v2258_v19 = vpop.f32.mrb[30].mxu0  ;;  %v2067_v10 = vunpack.c.l.bf16 %v2177_v4 }
 0x188   : > { %v2653_v15 = vpop.eup %2652  ;;  %2658 = vrcp.f32 %v1001_v9  ;;  %v2321_v18 = vadd.f32 %v2320_v14, %v2319_v12  ;;  %v2322_v21 = vpop.f32.mrb[30].mxu1  ;;  %v2035_v9 = vunpack.c.l.bf16 %v2170_v2  ;;  %v2036_v14 = vunpack.c.h.bf16 %v2170_v2 }
 0x189   : > { %v2259_v22 = vpop.f32.mrb[31].mxu0  ;;  %v2323_v23 = vpop.f32.mrb[31].mxu1  ;;  %1088 = vperm.xlu0 %2574, %v2653_v15   ;;  %v2068_v15 = vunpack.c.h.bf16 %v2177_v4  ;;  %v1023_v20 = vadd.f32 %v975_v7, %v3150_v36  ;;  %v2174_v4 = vld [vmem:[%s3205_s16 + $0x30] sm:$0xff]  }
 0x18a   : > { %v2655_v24 = vpop.eup %2654  ;;  %v3189_v25 = vadd.f32 %v2321_v18, %v2257_v17  ;;  %v2260_v26 = vadd.f32 %v2259_v22, %v2258_v19  ;;  %v2324_v28 = vadd.f32 %v2323_v23, %v2322_v21  ;;  %v976_v17 = vadd.f32 %v2067_v10, %v2035_v9  ;;  %v2171_v19 = vld [vmem:[%s3205_s16 + $0x18] sm:$0xff]  }
 0x18b   : > { %1093 = vperm.xlu1 %2575, %v2655_v24   ;;  %v2178_v21 = vld [vmem:[%s3208_s25 + $0x18] sm:$0xff]   ;;  %v977_v23 = vadd.f32 %v2068_v15, %v2036_v14  ;;  %v2039_v24 = vunpack.c.l.bf16 %v2171_v19  ;;  %v2051_v7 = vunpack.c.l.bf16 %v2174_v4 }
 0x18c   : > { %v1002_v29 = vadd.f32 1.0, %v3189_v25  ;;  %v3192_v30 = vadd.f32 %v2324_v28, %v2260_v26  ;;  %v1024_v32 = vadd.f32 %v976_v17, %v3159_v52  ;;  %v2071_v26 = vunpack.c.l.bf16 %v2178_v21 }
 0x18e   : > { %2660 = vrcp.f32 %v1002_v29  ;;  %v1003_v33 = vadd.f32 1.0, %v3192_v30 }
 0x190   : > { %v2657_v34 = vpop.eup %2656  ;;  %2662 = vrcp.f32 %v1003_v33  ;;  %v1025_v33 = vadd.f32 %v977_v23, %v3162_v57 }
 0x191   : > { %1098 = vperm.xlu0 %2574, %v2657_v34   ;;  %v2040_v34 = vunpack.c.h.bf16 %v2171_v19  ;;  %v2182_v19 = vld [vmem:[%s3208_s25 + $0x38] sm:$0xff]  }
 0x192   : > { %v2659_v35 = vpop.eup %2658 }
 0x193   : > { %1103 = vperm.xlu1 %2575, %v2659_v35   ;;  %v2072_v35 = vunpack.c.h.bf16 %v2178_v21 }
 0x195   : > { %v979_v41 = vadd.f32 %v2072_v35, %v2040_v34 }
 0x197   : > { %v1027_v57 = vadd.f32 %v979_v41, %v3168_v11  ;;  %v1029_v11 = vadd.f32 %v981_v56, %v3174_v31  ;;  %v1319_v41 = vld [vmem:[%s3408_s5 + $0x18] sm:$0xff] }
 0x198   : > { %v2661_v37 = vpop.eup %2660 }
 0x199   : > { %1108 = vperm.xlu0 %2574, %v2661_v37  }
 0x19a   : > { %v2663_v38 = vpop.eup %2662 }
 0x19b   : > { %1113 = vperm.xlu1 %2575, %v2663_v38   ;;  %v978_v38 = vadd.f32 %v2071_v26, %v2039_v24 }
 0x19d   : > { %v1026_v52 = vadd.f32 %v978_v38, %v3165_v6  ;;  %v1028_v6 = vadd.f32 %v980_v53, %v3171_v27 }
 0x1e0   : > { %v1039_v59 = vpop.permute.xlu0 %1038 }
 0x1e1   : > { %v1116_v60 = vmul.f32 %v1039_v59, %v1020_v54  ;;  %v2173_v54 = vld [vmem:[%s3205_s16 + $0x28] sm:$0xff]   ;;  %v2079_v59 = vunpack.c.l.bf16 %v2180_v55 }
 0x1e2   : > { %v2047_v58 = vunpack.c.l.bf16 %v2173_v54  ;;  %v2048_v62 = vunpack.c.h.bf16 %v2173_v54 }
 0x1e3   : > { %2409 = vmatprep.mubr.f32.mxu0 %v1116_v60 }
 0x1e4   : > { %v1044_v1 = vpop.permute.xlu0 %1043  ;;  %v982_v2 = vadd.f32 %v2079_v59, %v2047_v58 }
 0x1e5   : > { %v1117_v5 = vmul.f32 %v1044_v1, %v1021_v61 }
 0x1e6   : > { %v1030_v27 = vadd.f32 %v982_v2, %v3177_v47  ;;  %v2087_v47 = vunpack.c.l.bf16 %v2182_v19 }
 0x1e7   : > { %2410 = vmatmul.mubr.f32.vlgmr.msra.gmra.mrb[32].mxu0 %v1117_v5  ;;  %v2181_v5 = vld [vmem:[%s3208_s25 + $0x30] sm:$0xff]   ;;  %s2023_s25 = sshll.u32 %s2903_s9, 10 }
 0x1e8   : > { %v1049_v12 = vpop.permute.xlu1 %1048  ;;  %v2083_v9 = vunpack.c.l.bf16 %v2181_v5  ;;  %v2084_v14 = vunpack.c.h.bf16 %v2181_v5  ;;  %s3314_s18 = scalar_lea.hbm %s3410_s7, %s2023_s25 }
 0x1e9   : > { %v1118_v13 = vmul.f32 %v1049_v12, %v1022_v16  ;;  %v983_v16 = vadd.f32 %v2080_v63, %v2048_v62 }
 0x1ea   : > { %v984_v17 = vadd.f32 %v2083_v9, %v2051_v7 }
 0x1eb   : > { %2412 = vmatprep.mubr.f32.mxu0 %v1118_v13  ;;  %v1031_v31 = vadd.f32 %v983_v16, %v3180_v51  ;;  %v2052_v13 = vunpack.c.h.bf16 %v2174_v4  ;;  %v2088_v51 = vunpack.c.h.bf16 %v2182_v19 }
 0x1ec   : > { %v1054_v18 = vpop.permute.xlu1 %1053 }
 0x1ed   : > { %v1119_v22 = vmul.f32 %v1054_v18, %v1023_v20  ;;  %v2175_v18 = vld [vmem:[%s3205_s16 + $0x38] sm:$0xff]   ;;  %v985_v21 = vadd.f32 %v2084_v14, %v2052_v13  ;;  %s1732_s16 = sshll.u32 %s3274_s20, 4  ;;  %s3306_s16 = int_to_ptr.vmem [resolvable:$true] %s1732_s16 }
 0x1ee   : > { %v2055_v23 = vunpack.c.l.bf16 %v2175_v18  ;;  %s2722_s11 = scalar_lea.vmem %s3306_s16, 1024  ;;  %p2729_p10 = scmp.lt.s32.totalorder %s3306_s16, %s2727_s17 }
 0x1ef   : > { %2413 = vmatmul.mubr.f32.gmra.mrb[34].mxu0 %v1119_v22  ;;  %v1032_v22 = vadd.f32 %v984_v17, %v3183_v3  ;;  %v1033_v26 = vadd.f32 %v985_v21, %v3186_v8  ;;  %v1318_v8 = vld [vmem:[%s3408_s5 + $0x10] sm:$0xff]  ;;  %p2723_p4 = scmp.ne.s32.totalorder %s3306_s16, %s2722_s11  ;;  %p2730_p13 = scmp.lt.s32.totalorder %s2728_s22, %s2722_s11 }
 0x1f0   : > { %v1059_v28 = vpop.permute.xlu0 %1058  ;;  %v986_v34 = vadd.f32 %v2087_v47, %v2055_v23 }
 0x1f1   : > { %v1120_v29 = vmul.f32 %v1059_v28, %v1024_v32  ;;  %v2056_v28 = vunpack.c.h.bf16 %v2175_v18  ;;  %p2724_p6 = pnand %p2723_p4, %p2973_p12  ;;  %p2731_p3 = por %p2730_p13, %p2729_p10 }
 0x1f2   : > { %v1064_v36 = vpop.permute.xlu1 %1063 }
 0x1f3   : > { %v1121_v37 = vmul.f32 %v1064_v36, %v1025_v33  ;;  %2415 = vmatprep.mubr.f32.mxu0 %v1120_v29  ;;  %v987_v35 = vadd.f32 %v2088_v51, %v2056_v28  ;;  %v1034_v36 = vadd.f32 %v986_v34, %v3189_v25  ;;  %v1931_v25 = vld [vmem:[%s3407_s4] ss:$0 sm:$0xff]  ;;  %p2725_p8 = pneg %p2724_p6 }
 0x1f4   : > { %v3269_v28 = vld [vmem:[%s3409_s6] ss:$0 sm:$0xff] }
 0x1f5   : > { %2416 = vmatmul.mubr.f32.gmra.mrb[36].mxu0 %v1121_v37  ;;  %v1035_v3 = vadd.f32 %v987_v35, %v3192_v30  ;;  %p2732_p7 = pnand %p2731_p3, %p2725_p8 }
 0x1f8   : > { %v1069_v44 = vpop.permute.xlu0 %1068 }
 0x1f9   : > { %v1122_v45 = vmul.f32 %v1069_v44, %v1026_v52  ;;  %v2501_v52 = vpack.c.bf16 %v1319_v41, %v1318_v8 }
 0x1fa   : > { %v1074_v49 = vpop.permute.xlu1 %1073 }
 0x1fb   : > { %v1123_v50 = vmul.f32 %v1074_v49, %v1027_v57  ;;  %2418 = vmatprep.mubr.f32.mxu0 %v1122_v45  ;;  %2502 = vmatprep.subr.bf16.mxu1 %v2501_v52 }
 0x1fc   : > { %2504 = vmatpush3.bf16.msra.mxu1 %v2501_v52 }
 0x1fd   : > { %2419 = vmatmul.mubr.f32.gmra.mrb[38].mxu0 %v1123_v50 }
 0x200   : > { %v1079_v60 = vpop.permute.xlu0 %1078 }
 0x201   : > { %v1124_v61 = vmul.f32 %v1079_v60, %v1028_v6 }
 0x202   : > { %v1084_v0 = vpop.permute.xlu1 %1083 }
 0x203   : > { %v1125_v1 = vmul.f32 %v1084_v0, %v1029_v11  ;;  %2421 = vmatprep.mubr.f32.mxu0 %v1124_v61 }
 0x205   : > { %2422 = vmatmul.mubr.f32.gmra.mrb[40].mxu0 %v1125_v1 }
 0x208   : > { %v1089_v10 = vpop.permute.xlu0 %1088 }
 0x209   : > { %v1126_v12 = vmul.f32 %v1089_v10, %v1030_v27 }
 0x20a   : > { %v1094_v15 = vpop.permute.xlu1 %1093 }
 0x20b   : > { %v1127_v20 = vmul.f32 %v1094_v15, %v1031_v31  ;;  %2424 = vmatprep.mubr.f32.mxu0 %v1126_v12 }
 0x20d   : > { %2425 = vmatmul.mubr.f32.gmra.mrb[42].mxu0 %v1127_v20 }
 0x210   : > { %v1099_v32 = vpop.permute.xlu0 %1098 }
 0x211   : > { %v1128_v24 = vmul.f32 %v1099_v32, %v1032_v22 }
 0x212   : > { %v1104_v29 = vpop.permute.xlu1 %1103 }
 0x213   : > { %v1129_v33 = vmul.f32 %v1104_v29, %v1033_v26  ;;  %2427 = vmatprep.mubr.f32.mxu0 %v1128_v24 }
 0x215   : > { %2428 = vmatmul.mubr.f32.gmra.mrb[44].mxu0 %v1129_v33 }
 0x218   : > { %v1109_v37 = vpop.permute.xlu0 %1108 }
 0x219   : > { %v1130_v38 = vmul.f32 %v1109_v37, %v1034_v36 }
 0x21a   : > { %v1114_v39 = vpop.permute.xlu1 %1113 }
 0x21b   : > { %v1131_v40 = vmul.f32 %v1114_v39, %v1035_v3  ;;  %2430 = vmatprep.mubr.f32.mxu0 %v1130_v38 }
 0x21d   : > { %2431 = vmatmul.mubr.f32.gmra.mrb[46].mxu0 %v1131_v40 }
 0x2ba   : > { %v2411_v30 = vpop.f32.mrb[32].mxu0 }
 0x2bb   : > { %v1227_v42 = vadd.f32 %v2411_v30, %v1931_v25  ;;  %v1221_v43 = vpop.f32.mrb[33].mxu0 }
 0x2bc   : > { %v1222_v44 = vadd.f32 %v1931_v25, %v1221_v43 }
 0x2bd   : > { %v1301_v57 = vmax.f32 %v1227_v42, 0.0 }
 0x2be   : > { %v1300_v45 = vmax.f32 %v1222_v44, 0.0 }
 0x2c0   : > { %2441 = vmatprep.mubr.msk.f32.mxu1 %vm1327_vm0, %v1300_v45 }
 0x2c1   : > { %2442 = vmatmul.mubr.msk.f32.vlgmr.msra.gmra.mrb[32].mxu1 %vm1327_vm0, %v1301_v57 }
 0x2c2   : > { %v2414_v46 = vpop.f32.mrb[34].mxu0 }
 0x2c3   : > { %v1237_v48 = vadd.f32 %v2414_v46, %v1931_v25  ;;  %v1231_v49 = vpop.f32.mrb[35].mxu0 }
 0x2c4   : > { %v1232_v50 = vadd.f32 %v1931_v25, %v1231_v49 }
 0x2c5   : > { %v1303_v54 = vmax.f32 %v1237_v48, 0.0 }
 0x2c6   : > { %v1302_v53 = vmax.f32 %v1232_v50, 0.0 }
 0x2c8   : > { %v2417_v55 = vpop.f32.mrb[36].mxu0  ;;  %2444 = vmatprep.mubr.msk.f32.mxu1 %vm1327_vm0, %v1302_v53 }
 0x2c9   : > { %v1247_v56 = vadd.f32 %v2417_v55, %v1931_v25  ;;  %v1241_v6 = vpop.f32.mrb[37].mxu0  ;;  %2445 = vmatmul.mubr.msk.f32.gmra.mrb[34].mxu1 %vm1327_vm0, %v1303_v54 }
 0x2ca   : > { %v1242_v58 = vadd.f32 %v1931_v25, %v1241_v6 }
 0x2cb   : > { %v1305_v60 = vmax.f32 %v1247_v56, 0.0 }
 0x2cc   : > { %v1304_v59 = vmax.f32 %v1242_v58, 0.0 }
 0x2ce   : > { %2447 = vmatprep.mubr.msk.f32.mxu1 %vm1327_vm0, %v1304_v59 }
 0x2cf   : > { %2448 = vmatmul.mubr.msk.f32.gmra.mrb[36].mxu1 %vm1327_vm0, %v1305_v60 }
 0x2d0   : > { %v2420_v61 = vpop.f32.mrb[38].mxu0 }
 0x2d1   : > { %v1257_v11 = vadd.f32 %v2420_v61, %v1931_v25  ;;  %v1251_v62 = vpop.f32.mrb[39].mxu0 }
 0x2d2   : > { %v1252_v63 = vadd.f32 %v1931_v25, %v1251_v62 }
 0x2d3   : > { %v1307_v1 = vmax.f32 %v1257_v11, 0.0 }
 0x2d4   : > { %v1306_v0 = vmax.f32 %v1252_v63, 0.0 }
 0x2d6   : > { %2450 = vmatprep.mubr.msk.f32.mxu1 %vm1327_vm0, %v1306_v0 }
 0x2d7   : > { %2451 = vmatmul.mubr.msk.f32.gmra.mrb[38].mxu1 %vm1327_vm0, %v1307_v1 }
 0x2d8   : > { %v2423_v2 = vpop.f32.mrb[40].mxu0 }
 0x2d9   : > { %v1267_v4 = vadd.f32 %v2423_v2, %v1931_v25  ;;  %v1261_v5 = vpop.f32.mrb[41].mxu0 }
 0x2da   : > { %v1262_v16 = vadd.f32 %v1931_v25, %v1261_v5 }
 0x2db   : > { %v1309_v7 = vmax.f32 %v1267_v4, 0.0 }
 0x2dc   : > { %v1308_v27 = vmax.f32 %v1262_v16, 0.0 }
 0x2de   : > { %2453 = vmatprep.mubr.msk.f32.mxu1 %vm1327_vm0, %v1308_v27 }
 0x2df   : > { %2454 = vmatmul.mubr.msk.f32.gmra.mrb[40].mxu1 %vm1327_vm0, %v1309_v7 }
 0x2e0   : > { %v2426_v9 = vpop.f32.mrb[42].mxu0 }
 0x2e1   : > { %v1277_v10 = vadd.f32 %v2426_v9, %v1931_v25  ;;  %v1271_v12 = vpop.f32.mrb[43].mxu0 }
 0x2e2   : > { %v1272_v31 = vadd.f32 %v1931_v25, %v1271_v12 }
 0x2e3   : > { %v1311_v14 = vmax.f32 %v1277_v10, 0.0 }
 0x2e4   : > { %v1310_v13 = vmax.f32 %v1272_v31, 0.0 }
 0x2e6   : > { %2456 = vmatprep.mubr.msk.f32.mxu1 %vm1327_vm0, %v1310_v13 }
 0x2e7   : > { %2457 = vmatmul.mubr.msk.f32.gmra.mrb[42].mxu1 %vm1327_vm0, %v1311_v14 }
 0x2e8   : > { %v2429_v15 = vpop.f32.mrb[44].mxu0 }
 0x2e9   : > { %v1287_v20 = vadd.f32 %v2429_v15, %v1931_v25  ;;  %v1281_v17 = vpop.f32.mrb[45].mxu0 }
 0x2ea   : > { %v1282_v18 = vadd.f32 %v1931_v25, %v1281_v17 }
 0x2eb   : > { %v1313_v21 = vmax.f32 %v1287_v20, 0.0 }
 0x2ec   : > { %v1312_v19 = vmax.f32 %v1282_v18, 0.0 }
 0x2ee   : > { %2459 = vmatprep.mubr.msk.f32.mxu1 %vm1327_vm0, %v1312_v19 }
 0x2ef   : > { %2460 = vmatmul.mubr.msk.f32.gmra.mrb[44].mxu1 %vm1327_vm0, %v1313_v21 }
 0x2f0   : > { %v2432_v22 = vpop.f32.mrb[46].mxu0 }
 0x2f1   : > { %v1297_v23 = vadd.f32 %v2432_v22, %v1931_v25  ;;  %v1291_v47 = vpop.f32.mrb[47].mxu0 }
 0x2f2   : > { %v1292_v32 = vadd.f32 %v1931_v25, %v1291_v47 }
 0x2f3   : > { %v1315_v26 = vmax.f32 %v1297_v23, 0.0 }
 0x2f4   : > { %v1314_v24 = vmax.f32 %v1292_v32, 0.0 }
 0x2f6   : > { %2462 = vmatprep.mubr.msk.f32.mxu1 %vm1327_vm0, %v1314_v24 }
 0x2f7   : > { %2463 = vmatmul.mubr.msk.f32.gmra.mrb[46].mxu1 %vm1327_vm0, %v1315_v26 }
 0x394   : > { %v2443_v51 = vpop.f32.mrb[32].mxu1 }
 0x395   : > { %v1448_v29 = vadd.f32 %v2443_v51, %v3269_v28  ;;  %v1442_v33 = vpop.f32.mrb[33].mxu1 }
 0x396   : > { %v1443_v34 = vadd.f32 %v3269_v28, %v1442_v33 }
 0x398   : > { %v1521_v35 = vpack.c.bf16 %v1448_v29, %v1443_v34 }
 0x39a   : > { %2093 = vst [vmem:[%s3274_s20] sm:$0xff] %v1521_v35   ;;  %v1601_v36 = vunpack.c.l.bf16 %v1521_v35  ;;  %v1602_v37 = vunpack.c.h.bf16 %v1521_v35 }
 0x39c   : > { %v1617_v38 = vsub.f32 %v1443_v34, %v1601_v36  ;;  %v1618_v3 = vsub.f32 %v1448_v29, %v1602_v37  ;;  %v2446_v39 = vpop.f32.mrb[34].mxu1 }
 0x39d   : > { %v1458_v40 = vadd.f32 %v2446_v39, %v3269_v28  ;;  %v1452_v8 = vpop.f32.mrb[35].mxu1 }
 0x39e   : > { %v2132_v41 = vpack.c.bf16 %v1618_v3, %v1617_v38  ;;  %v1453_v52 = vadd.f32 %v3269_v28, %v1452_v8 }
 0x3a0   : > { %2133 = vst [vmem:[%s3279_s26] sm:$0xff] %v2132_v41   ;;  %v1522_v25 = vpack.c.bf16 %v1458_v40, %v1453_v52 }
 0x3a2   : > { %2183 = vst [vmem:[%s3274_s20 + $0x8] sm:$0xff] %v1522_v25   ;;  %v1603_v30 = vunpack.c.l.bf16 %v1522_v25  ;;  %v1604_v42 = vunpack.c.h.bf16 %v1522_v25  ;;  %v2449_v43 = vpop.f32.mrb[36].mxu1 }
 0x3a3   : > { %v1468_v44 = vadd.f32 %v2449_v43, %v3269_v28  ;;  %v1462_v45 = vpop.f32.mrb[37].mxu1 }
 0x3a4   : > { %v1619_v57 = vsub.f32 %v1453_v52, %v1603_v30  ;;  %v1620_v46 = vsub.f32 %v1458_v40, %v1604_v42  ;;  %v1463_v48 = vadd.f32 %v3269_v28, %v1462_v45 }
 0x3a6   : > { %v2137_v49 = vpack.c.bf16 %v1620_v46, %v1619_v57  ;;  %v1523_v50 = vpack.c.bf16 %v1468_v44, %v1463_v48 }
 0x3a8   : > { %2190 = vst [vmem:[%s3279_s26 + $0x8] sm:$0xff] %v2137_v49   ;;  %2184 = vst [vmem:[%s3274_s20 + $0x10] sm:$0xff] %v1523_v50   ;;  %v1605_v53 = vunpack.c.l.bf16 %v1523_v50  ;;  %v1606_v54 = vunpack.c.h.bf16 %v1523_v50 }
 0x3aa   : > { %v1621_v55 = vsub.f32 %v1463_v48, %v1605_v53  ;;  %v1622_v56 = vsub.f32 %v1468_v44, %v1606_v54  ;;  %v2452_v6 = vpop.f32.mrb[38].mxu1 }
 0x3ab   : > { %v1478_v58 = vadd.f32 %v2452_v6, %v3269_v28  ;;  %v1472_v59 = vpop.f32.mrb[39].mxu1 }
 0x3ac   : > { %v2142_v60 = vpack.c.bf16 %v1622_v56, %v1621_v55  ;;  %v1473_v61 = vadd.f32 %v3269_v28, %v1472_v59 }
 0x3ae   : > { %2191 = vst [vmem:[%s3279_s26 + $0x10] sm:$0xff] %v2142_v60   ;;  %v1524_v11 = vpack.c.bf16 %v1478_v58, %v1473_v61 }
 0x3b0   : > { %2185 = vst [vmem:[%s3274_s20 + $0x18] sm:$0xff] %v1524_v11   ;;  %v1607_v62 = vunpack.c.l.bf16 %v1524_v11  ;;  %v1608_v63 = vunpack.c.h.bf16 %v1524_v11 }
 0x3b2   : > { %v1623_v0 = vsub.f32 %v1473_v61, %v1607_v62  ;;  %v1624_v1 = vsub.f32 %v1478_v58, %v1608_v63  ;;  %v2455_v2 = vpop.f32.mrb[40].mxu1 }
 0x3b3   : > { %v1488_v4 = vadd.f32 %v2455_v2, %v3269_v28  ;;  %v1482_v5 = vpop.f32.mrb[41].mxu1 }
 0x3b4   : > { %v2147_v16 = vpack.c.bf16 %v1624_v1, %v1623_v0  ;;  %v1483_v27 = vadd.f32 %v3269_v28, %v1482_v5 }
 0x3b6   : > { %2192 = vst [vmem:[%s3279_s26 + $0x18] sm:$0xff] %v2147_v16   ;;  %v1525_v7 = vpack.c.bf16 %v1488_v4, %v1483_v27 }
 0x3b8   : > { %2186 = vst [vmem:[%s3274_s20 + $0x20] sm:$0xff] %v1525_v7   ;;  %v1609_v9 = vunpack.c.l.bf16 %v1525_v7  ;;  %v1610_v10 = vunpack.c.h.bf16 %v1525_v7 }
 0x3ba   : > { %v1625_v12 = vsub.f32 %v1483_v27, %v1609_v9  ;;  %v1626_v31 = vsub.f32 %v1488_v4, %v1610_v10  ;;  %v2458_v13 = vpop.f32.mrb[42].mxu1 }
 0x3bb   : > { %v1498_v14 = vadd.f32 %v2458_v13, %v3269_v28  ;;  %v1492_v15 = vpop.f32.mrb[43].mxu1 }
 0x3bc   : > { %v2152_v20 = vpack.c.bf16 %v1626_v31, %v1625_v12  ;;  %v1493_v17 = vadd.f32 %v3269_v28, %v1492_v15 }
 0x3be   : > { %2193 = vst [vmem:[%s3279_s26 + $0x20] sm:$0xff] %v2152_v20   ;;  %v1526_v18 = vpack.c.bf16 %v1498_v14, %v1493_v17 }
 0x3c0   : > { %2187 = vst [vmem:[%s3274_s20 + $0x28] sm:$0xff] %v1526_v18   ;;  %v1611_v19 = vunpack.c.l.bf16 %v1526_v18  ;;  %v1612_v21 = vunpack.c.h.bf16 %v1526_v18 }
 0x3c2   : > { %v1627_v22 = vsub.f32 %v1493_v17, %v1611_v19  ;;  %v1628_v23 = vsub.f32 %v1498_v14, %v1612_v21  ;;  %v2461_v47 = vpop.f32.mrb[44].mxu1 }
 0x3c3   : > { %v1508_v32 = vadd.f32 %v2461_v47, %v3269_v28  ;;  %v1502_v24 = vpop.f32.mrb[45].mxu1 }
 0x3c4   : > { %v2157_v26 = vpack.c.bf16 %v1628_v23, %v1627_v22  ;;  %v1503_v51 = vadd.f32 %v3269_v28, %v1502_v24 }
 0x3c6   : > { %2194 = vst [vmem:[%s3279_s26 + $0x28] sm:$0xff] %v2157_v26   ;;  %v1527_v29 = vpack.c.bf16 %v1508_v32, %v1503_v51 }
 0x3c8   : > { %2188 = vst [vmem:[%s3274_s20 + $0x30] sm:$0xff] %v1527_v29   ;;  %v1613_v33 = vunpack.c.l.bf16 %v1527_v29  ;;  %v1614_v34 = vunpack.c.h.bf16 %v1527_v29 }
 0x3ca   : > { %v1629_v35 = vsub.f32 %v1503_v51, %v1613_v33  ;;  %v1630_v36 = vsub.f32 %v1508_v32, %v1614_v34  ;;  %v2464_v37 = vpop.f32.mrb[46].mxu1 }
 0x3cb   : > { %v1518_v38 = vadd.f32 %v2464_v37, %v3269_v28  ;;  %v1512_v3 = vpop.f32.mrb[47].mxu1 }
 0x3cc   : > { %v2162_v39 = vpack.c.bf16 %v1630_v36, %v1629_v35  ;;  %v1513_v40 = vadd.f32 %v3269_v28, %v1512_v3 }
 0x3ce   : > { %2195 = vst [vmem:[%s3279_s26 + $0x30] sm:$0xff] %v2162_v39   ;;  %v1528_v8 = vpack.c.bf16 %v1518_v38, %v1513_v40 }
 0x3d0   : > { %2189 = vst [vmem:[%s3274_s20 + $0x38] sm:$0xff] %v1528_v8   ;;  %v1615_v41 = vunpack.c.l.bf16 %v1528_v8  ;;  %v1616_v52 = vunpack.c.h.bf16 %v1528_v8 }
 0x3d1   : > { %2735 = shalt.err (!%p2732_p7)
}
 0x3d2   : > { %s2736_s20 = scalar_lea.hbm %s3314_s18, 1024  ;;  %s2740_s14 = scalar_lea.hbm %s3410_s7, 2048 }
 0x3d3   : > { %p2737_p9 = scmp.ne.s32.totalorder %s3314_s18, %s2736_s20  ;;  %p2741_p5 = scmp.lt.u32.totalorder %s3314_s18, %s3410_s7 }
 0x3d4   : > { %p2742_p11 = scmp.lt.u32.totalorder %s2740_s14, %s2736_s20  ;;  %p2744_p4 = scmp.lt.u32.totalorder %s2736_s20, %s3314_s18 }
 0x3d5   : > { %p2738_p2 = pnand %p2737_p9, %p2973_p12 }
 0x3d6   : > { %p2743_p1 = por %p2742_p11, %p2741_p5 }
 0x3d7   : > { %p2739_p0 = pneg %p2738_p2 }
 0x3d8   : > { %p2745_p6 = por %p2744_p4, %p2743_p1 }
 0x3da   : > { %p2746_p8 = pnand %p2745_p6, %p2739_p0 }
 0x3dc   : > { %2749 = shalt.err (!%p2746_p8)
}
 0x3dd   : > { %s2834_s11 = smov 64   ;;  %s2835_s22 = smov 4   ;;  %v1631_v28 = vsub.f32 %v1513_v40, %v1615_v41  ;;  %v1632_v25 = vsub.f32 %v1518_v38, %v1616_v52 }
 0x3de   : > { %2511 = dma.vmem_to_hbm [thread:$0]  (%p2973_p12), %s3306_s16, 1024, %s3314_s18, %s1714_s19, %s2834_s11, %s2834_s11, %s2835_s22  }
 0x3df   : > { %v2167_v30 = vpack.c.bf16 %v1632_v25, %v1631_v28  ;;  %s3351_s13 = scalar_lea.hbm %s3411_s8, %s2023_s25  ;;  %s3429_s21 = sshll.u32 %s3279_s26, 4  ;;  %s3355_s21 = int_to_ptr.vmem [resolvable:$true] %s3429_s21 }
 0x3e0   : > { %s1719_s14 = scalar_lea.sflag [#allocation9], %s3021_s10  ;;  %s2750_s17 = scalar_lea.vmem %s3355_s21, 1024 }
 0x3e1   : > { %2196 = vst [vmem:[%s3279_s26 + $0x38] sm:$0xff] %v2167_v30   ;;  %p2751_p10 = scmp.ne.s32.totalorder %s3355_s21, %s2750_s17  ;;  %s2836_s16 = smov [#allocation8]  }
 0x3e2   : > { %s2754_s9 = sshll.u32 %s2836_s16, 4  ;;  %s2755_s9 = int_to_ptr.vmem [resolvable:$false] %s2754_s9 }
 0x3e3   : > { %p2752_p13 = pnand %p2751_p10, %p2973_p12  ;;  %s2756_s18 = scalar_lea.vmem %s2755_s9, 2048 }
 0x3e4   : > { %p2757_p7 = scmp.lt.s32.totalorder %s3355_s21, %s2755_s9  ;;  %p2758_p9 = scmp.lt.s32.totalorder %s2756_s18, %s2750_s17 }
 0x3e5   : > { %p2753_p3 = pneg %p2752_p13 }
 0x3e6   : > { %p2759_p2 = por %p2758_p9, %p2757_p7 }
 0x3e8   : > { %p2760_p0 = pnand %p2759_p2, %p2753_p3 }
 0x3ea   : > { %2763 = shalt.err (!%p2760_p0)
}
 0x3eb   : > { %s2764_s26 = scalar_lea.hbm %s3351_s13, 1024  ;;  %s2768_s15 = scalar_lea.hbm %s3411_s8, 2048 }
 0x3ec   : > { %p2765_p5 = scmp.ne.s32.totalorder %s3351_s13, %s2764_s26  ;;  %p2769_p4 = scmp.lt.u32.totalorder %s3351_s13, %s3411_s8 }
 0x3ed   : > { %p2770_p6 = scmp.lt.u32.totalorder %s2768_s15, %s2764_s26  ;;  %p2772_p10 = scmp.lt.u32.totalorder %s2764_s26, %s3351_s13 }
 0x3ee   : > { %p2766_p11 = pnand %p2765_p5, %p2973_p12 }
 0x3ef   : > { %p2771_p8 = por %p2770_p6, %p2769_p4 }
 0x3f0   : > { %p2767_p1 = pneg %p2766_p11 }
 0x3f1   : > { %p2773_p13 = por %p2772_p10, %p2771_p8 }
 0x3f3   : > { %p2774_p3 = pnand %p2773_p13, %p2767_p1 }
 0x3f5   : > { %2777 = shalt.err (!%p2774_p3)
}
 0x3f6   : > { %2512 = dma.vmem_to_hbm [thread:$0]  (%p2973_p12), %s3355_s21, 1024, %s3351_s13, %s1719_s14, %s2834_s11, %s2834_s11, %s2835_s22  }
 0x3f7 PF: > { %s1763_s17 = sand.u32 1, %s2812_s27   ;;  %p3430_p7 = scmp.ne.s32.totalorder %s3418_s12, 0 }
 0x3f8   : > { %p3431_p9 = scmp.ge.s32.totalorder %s2824_s30, 2  ;;  %s1764_s9 = scalar_lea.sflag [#allocation4], %s1763_s17 }
 0x3fa   : > { %p2524_p2 = pnand %p3431_p9, %p3430_p7 }
 0x3fc   : > { %2803 = dma.done.wait (!%p2524_p2), %s1764_s9, 1024  }
 0x3fd   : > { %2805 = vsyncadd (!%p2524_p2), %s1764_s9, 4294966272  ;;  %s1773_s24 = scalar_lea.sflag [#allocation9], %s1763_s17 }
 0x3fe   : > { %2807 = dma.done.wait (!%p2524_p2), %s1773_s24, 1024  }
 0x3ff   : > { %2809 = vsyncadd (!%p2524_p2), %s1773_s24, 4294966272  ;;  %s3432_s30 = sld [smem:[#allocation14_spill]]  ;;  %s3433_s27 = smov %s2816_s28 }
 0x400   : > { %s3434_s28 = smov %s2820_s29  ;;  %s3435_s29 = smov %s2969_s23 }
 0x405   : > { %p26_p12 = scmp.ge.s32.totalorder %s3432_s30, 4  }
 0x407   :  { %28 = sbr.rel (!%p26_p12) target bundleno = 8 (0x8), region = 116 }
 0x40e   :  { %1778 = vsyncpa [#allocation3], 1 }
 0x40f   :  { %1780 = vsyncpa [#allocation3 + $0x1], 1 }
 0x410   :  { %1781 = vsyncpa [#allocation6], 1 }
 0x411   :  { %1782 = vsyncpa [#allocation4], 1 }
 0x412   :  { %1784 = vsyncpa [#allocation4 + $0x1], 1 }
 0x413   :  { %1785 = vsyncpa [#allocation9], 1 }
 0x414   :  { %1787 = vsyncpa [#allocation9 + $0x1], 1 }

</bundles_post_ra>
